<compile_context>
chip_gen: v6e
topology: v6e:2x2x1
jax: 0.10.0
libtpu: 0.0.40
codegen_flags: <defaults>
</compile_context>

<pallas_src>
import functools

import jax
import jax.numpy as jnp
import numpy as np
from jax.experimental import pallas as pl
from jax.experimental.pallas import tpu as pltpu

LANE = 128
_VMEM_SPEC = pl.BlockSpec(memory_space=pltpu.MemorySpace.VMEM)


def _round_up(n, m):
    return ((n + m - 1) // m) * m


def _pad_axis(a, axis, target):
    if a.shape[axis] >= target:
        return a
    widths = [(0, 0)] * a.ndim
    widths[axis] = (0, target - a.shape[axis])
    return jnp.pad(a, widths)


@functools.lru_cache(maxsize=1)
def _vmem_limit_bytes():
    """Generation-aware VMEM budget: ~3/4 of physical, capped at 100 MiB.
    -> ~48 MiB on v7x (64 MiB physical), ~96 MiB on v5e/v6e (128 MiB)."""
    try:
        cap = int(pltpu.get_tpu_info().vmem_capacity_bytes)
    except Exception:  # pragma: no cover - conservative fallback (safe on v7x)
        cap = 64 * 1024 * 1024
    return min((cap * 3) // 4, 100 * 1024 * 1024)


# ---------------------------------------------------------------------------
# Fused Pallas kernel: all layers + output linear in one body
# ---------------------------------------------------------------------------
def _make_fused_kernel(num_layers):
    def kernel(x_ref, ea_ref, row_ref, col_ref, *refs):
        # refs layout: 12 weight/bias refs per layer, then out_w, out_b, out_ref
        out_ref = refs[-1]
        out_w_ref = refs[num_layers * 12]
        out_b_ref = refs[num_layers * 12 + 1]

        x = x_ref[...]                                 # [Nn, in_ch]  f32
        ea_bf = ea_ref[...].astype(jnp.bfloat16)       # [Ep, edge_dim] (hoisted cast)
        Nn = x.shape[0]
        E = ea_bf.shape[0]                             # padded edge count (x128)

        # ---- layer-invariant gather/scatter one-hots + inverse degree (ONCE) ----
        row = row_ref[...]        # [1, Ep] int32, padded entries = -1 (scatter tgt)
        col = col_ref[...]        # [Ep, 1] int32, padded entries = -1 (gather src)
        # bf16 one-hots built directly from the compare: 0/1 exact in bf16,
        # no f32 intermediates.  Sentinel -1 never matches the iota.
        scat_bf = (jax.lax.broadcasted_iota(jnp.int32, (Nn, E), 0)
                   == row).astype(jnp.bfloat16)                 # [Nn, Ep]
        gath_bf = (jax.lax.broadcasted_iota(jnp.int32, (E, Nn), 1)
                   == col).astype(jnp.bfloat16)                 # [Ep, Nn]
        # per-node in-degree on the MXU (f32 accumulation), once for all layers
        counts = jnp.dot(scat_bf, jnp.ones((E, 1), jnp.bfloat16),
                         preferred_element_type=jnp.float32)    # [Nn, 1]
        inv_counts = 1.0 / jnp.maximum(counts, 1.0)

        def mmb(a_bf, w_ref):
            # bf16 MXU operands (weights are pre-cast bf16), f32 accumulation
            return jnp.dot(a_bf, w_ref[...], preferred_element_type=jnp.float32)

        def mm(a, w_ref):
            return mmb(a.astype(jnp.bfloat16), w_ref)

        for l in range(num_layers):
            (ne_w1, ne_b1, ne_w2, ne_b2,
             ee_w1, ee_b1, ee_w2, ee_b2,
             msg_w, msg_b, upd_w, upd_b) = refs[l * 12:(l + 1) * 12]

            # node encoder: Linear -> ReLU -> Linear
            h = jnp.maximum(mm(x, ne_w1) + ne_b1[...], 0.0)
            h = mm(h, ne_w2) + ne_b2[...]                       # [Nn, Hp]
            # edge encoder (always applied to the ORIGINAL edge_attr, as in module)
            e = jnp.maximum(mmb(ea_bf, ee_w1) + ee_b1[...], 0.0)
            e = mm(e, ee_w2) + ee_b2[...]                       # [Ep, Hp]

            # gather h[col] on the MXU: [Ep, Nn] @ [Nn, Hp]
            gathered = mmb(gath_bf, h.astype(jnp.bfloat16))     # [Ep, Hp]
            # message function (padded edges produce garbage but are dropped
            # by the zero scatter rows)
            msg = mm(gathered + e, msg_w) + msg_b[...]          # [Ep, Hp]
            # scatter-mean over row on the MXU: [Nn, Ep] @ [Ep, Hp], f32 acc
            summed = mmb(scat_bf, msg.astype(jnp.bfloat16))     # [Nn, Hp]
            mean = summed * inv_counts
            # update function -> next layer input
            x = mm(mean, upd_w) + upd_b[...]                    # [Nn, Hp]

        # final out_layer (lane-dense padded output store)
        out_ref[...] = (mm(x, out_w_ref) + out_b_ref[...]).astype(out_ref.dtype)

    return kernel


# ---------------------------------------------------------------------------
# Wrapper around pallas_call
# ---------------------------------------------------------------------------
@functools.partial(jax.jit, static_argnames=("out_ch",))
def mpnn_forward(x, edge_index, edge_attr, pparams, *, out_ch):
    """MPNN.forward with mask=None (default): every node is valid."""
    B, N, C = x.shape
    Nn = B * N
    E = edge_attr.shape[0]
    layers = pparams["layers"]

    xf = x.reshape(Nn, C)

    # ---- pad the edge dimension to a multiple of 128 (lane/sublane dense) ----
    # sentinel -1 never matches the node iota -> padded edges are inert.
    E_pad = _round_up(max(E, 1), LANE)
    pad_e = E_pad - E
    row = jnp.pad(edge_index[0].astype(jnp.int32), (0, pad_e),
                  constant_values=-1).reshape(1, E_pad)          # scatter target
    col = jnp.pad(edge_index[1].astype(jnp.int32), (0, pad_e),
                  constant_values=-1).reshape(E_pad, 1)          # gather source
    ea = jnp.pad(edge_attr, ((0, pad_e), (0, 0)))                # zero edge rows

    args = [xf, ea, row, col]
    for lp in layers:
        args += [lp["ne_w1"], lp["ne_b1"], lp["ne_w2"], lp["ne_b2"],
                 lp["ee_w1"], lp["ee_b1"], lp["ee_w2"], lp["ee_b2"],
                 lp["msg_w"], lp["msg_b"], lp["upd_w"], lp["upd_b"]]
    args += [pparams["out_w"], pparams["out_b"]]

    out_pad = pparams["out_w"].shape[1]
    out = pl.pallas_call(
        _make_fused_kernel(len(layers)),
        out_shape=jax.ShapeDtypeStruct((Nn, out_pad), jnp.float32),
        in_specs=[_VMEM_SPEC] * len(args),
        out_specs=_VMEM_SPEC,
        compiler_params=pltpu.CompilerParams(vmem_limit_bytes=_vmem_limit_bytes()),
    )(*args)
    return out[:, :out_ch].reshape(B, N, out_ch)


# ---------------------------------------------------------------------------
# Deterministic parameter init (PyTorch nn.Linear-style uniform)
# ---------------------------------------------------------------------------
def init_linear(key, fan_in, fan_out):
    kw, kb = jax.random.split(key)
    bound = 1.0 / np.sqrt(fan_in)
    w = jax.random.uniform(kw, (fan_in, fan_out), jnp.float32, -bound, bound)
    b = jax.random.uniform(kb, (1, fan_out), jnp.float32, -bound, bound)
    return w, b


def init_block(key, in_ch, hid, out_ch, edge_dim):
    ks = jax.random.split(key, 6)
    p = {}
    p["ee_w1"], p["ee_b1"] = init_linear(ks[0], edge_dim, hid)
    p["ee_w2"], p["ee_b2"] = init_linear(ks[1], hid, hid)
    p["ne_w1"], p["ne_b1"] = init_linear(ks[2], in_ch, hid)
    p["ne_w2"], p["ne_b2"] = init_linear(ks[3], hid, hid)
    p["msg_w"], p["msg_b"] = init_linear(ks[4], hid, hid)
    p["upd_w"], p["upd_b"] = init_linear(ks[5], hid, out_ch)
    return p


def init_mpnn(key, in_ch, hid, out_ch, edge_dim, num_layers):
    keys = jax.random.split(key, num_layers + 1)
    layers = [init_block(keys[0], in_ch, hid, hid, edge_dim)]
    for i in range(1, num_layers):
        layers.append(init_block(keys[i], hid, hid, hid, edge_dim))
    out_w, out_b = init_linear(keys[-1], hid, out_ch)
    return {"layers": layers, "out_w": out_w, "out_b": out_b}


# ---------------------------------------------------------------------------
# Host-side prep: zero-pad lane dims to 128 and cast weights to bf16
# ---------------------------------------------------------------------------
def prepare_params(params, lane=LANE):
    """Zero-pad output lanes (and padded-hidden contraction dims) up to `lane`
    and cast weights to bf16.  Padding is exact: padded weight rows/cols and
    bias lanes are zero, so real output lanes are unchanged and pad lanes stay 0.
    NOTE: lane-padding hid=32 -> 128 makes each 128x128 matmul ~16x the real
    MAC work; fine while latency-bound, revisit for MXU-bound sizes."""

    def prep(w, b, pad_in):
        if pad_in:
            w = _pad_axis(w, 0, _round_up(w.shape[0], lane))
        w = _pad_axis(w, 1, _round_up(w.shape[1], lane)).astype(jnp.bfloat16)
        b = _pad_axis(b, 1, _round_up(b.shape[1], lane))          # bias stays f32
        return w, b

    new_layers = []
    for i, lp in enumerate(params["layers"]):
        nl = {}
        # layer 0 node encoder consumes raw x (unpadded in_ch); later layers
        # consume the previous layer's lane-padded output.
        nl["ne_w1"], nl["ne_b1"] = prep(lp["ne_w1"], lp["ne_b1"], pad_in=(i > 0))
        nl["ne_w2"], nl["ne_b2"] = prep(lp["ne_w2"], lp["ne_b2"], pad_in=True)
        # edge encoder always consumes raw edge_attr (unpadded edge_dim).
        nl["ee_w1"], nl["ee_b1"] = prep(lp["ee_w1"], lp["ee_b1"], pad_in=False)
        nl["ee_w2"], nl["ee_b2"] = prep(lp["ee_w2"], lp["ee_b2"], pad_in=True)
        nl["msg_w"], nl["msg_b"] = prep(lp["msg_w"], lp["msg_b"], pad_in=True)
        nl["upd_w"], nl["upd_b"] = prep(lp["upd_w"], lp["upd_b"], pad_in=True)
        new_layers.append(nl)
    out_w, out_b = prep(params["out_w"], params["out_b"], pad_in=True)
    return {"layers": new_layers, "out_w": out_w, "out_b": out_b}


# ---------------------------------------------------------------------------
# Pure-JAX f32 reference (for correctness checking)
# ---------------------------------------------------------------------------
def ref_layer(x, edge_index, edge_attr, p):
    h = jnp.maximum(x @ p["ne_w1"] + p["ne_b1"], 0.0) @ p["ne_w2"] + p["ne_b2"]
    e = jnp.maximum(edge_attr @ p["ee_w1"] + p["ee_b1"], 0.0) @ p["ee_w2"] + p["ee_b2"]
    row, col = edge_index[0], edge_index[1]
    msg = (h[col] + e) @ p["msg_w"] + p["msg_b"]
    summed = jnp.zeros((x.shape[0], msg.shape[1]), jnp.float32).at[row].add(msg)
    counts = jnp.zeros((x.shape[0],), jnp.float32).at[row].add(1.0)
    mean = summed / jnp.maximum(counts, 1.0)[:, None]
    return mean @ p["upd_w"] + p["upd_b"]


def ref_forward(x, edge_index, edge_attr, params):
    B, N, C = x.shape
    xf = x.reshape(B * N, C)
    for lp in params["layers"]:
        xf = ref_layer(xf, edge_index, edge_attr, lp)
    out = xf @ params["out_w"] + params["out_b"]
    return out.reshape(B, N, -1)


# ---------------------------------------------------------------------------
if __name__ == "__main__":
    B, N, IN_CH, HID, OUT_CH, EDGE_DIM, E, NUM_LAYERS = 2, 8, 4, 32, 8, 6, 24, 2

    key = jax.random.PRNGKey(0)
    k_par, k_x, k_ei, k_ea = jax.random.split(key, 4)

    params = init_mpnn(k_par, IN_CH, HID, OUT_CH, EDGE_DIM, NUM_LAYERS)
    pparams = prepare_params(params)   # padded + bf16 weights for the kernel

    x = jax.random.normal(k_x, (B, N, IN_CH), jnp.float32)
    # note: edges drawn over the B*N flattened nodes (matches the JAX reference)
    edge_index = jax.random.randint(k_ei, (2, E), 0, B * N, jnp.int32)
    edge_attr = jax.random.normal(k_ea, (E, EDGE_DIM), jnp.float32)

    out = mpnn_forward(x, edge_index, edge_attr, pparams, out_ch=OUT_CH)
    out = jax.block_until_ready(out)

    ref = ref_forward(x, edge_index, edge_attr, params)
    # tolerance reflects bf16 MXU operands with f32 accumulation vs f32 reference
    np.testing.assert_allclose(np.asarray(out), np.asarray(ref),
                               rtol=5e-2, atol=5e-2)

    print("KERNEL_OK")
</pallas_src>

<mosaic_0001>
module attributes {stable_mosaic.version = 11 : i64} {
  func.func @kernel(%arg0: memref<16x4xf32, #tpu.memory_space<vmem>>, %arg1: memref<128x6xf32, #tpu.memory_space<vmem>>, %arg2: memref<1x128xi32, #tpu.memory_space<vmem>>, %arg3: memref<128x1xi32, #tpu.memory_space<vmem>>, %arg4: memref<4x128xbf16, #tpu.memory_space<vmem>>, %arg5: memref<1x128xf32, #tpu.memory_space<vmem>>, %arg6: memref<128x128xbf16, #tpu.memory_space<vmem>>, %arg7: memref<1x128xf32, #tpu.memory_space<vmem>>, %arg8: memref<6x128xbf16, #tpu.memory_space<vmem>>, %arg9: memref<1x128xf32, #tpu.memory_space<vmem>>, %arg10: memref<128x128xbf16, #tpu.memory_space<vmem>>, %arg11: memref<1x128xf32, #tpu.memory_space<vmem>>, %arg12: memref<128x128xbf16, #tpu.memory_space<vmem>>, %arg13: memref<1x128xf32, #tpu.memory_space<vmem>>, %arg14: memref<128x128xbf16, #tpu.memory_space<vmem>>, %arg15: memref<1x128xf32, #tpu.memory_space<vmem>>, %arg16: memref<128x128xbf16, #tpu.memory_space<vmem>>, %arg17: memref<1x128xf32, #tpu.memory_space<vmem>>, %arg18: memref<128x128xbf16, #tpu.memory_space<vmem>>, %arg19: memref<1x128xf32, #tpu.memory_space<vmem>>, %arg20: memref<6x128xbf16, #tpu.memory_space<vmem>>, %arg21: memref<1x128xf32, #tpu.memory_space<vmem>>, %arg22: memref<128x128xbf16, #tpu.memory_space<vmem>>, %arg23: memref<1x128xf32, #tpu.memory_space<vmem>>, %arg24: memref<128x128xbf16, #tpu.memory_space<vmem>>, %arg25: memref<1x128xf32, #tpu.memory_space<vmem>>, %arg26: memref<128x128xbf16, #tpu.memory_space<vmem>>, %arg27: memref<1x128xf32, #tpu.memory_space<vmem>>, %arg28: memref<128x128xbf16, #tpu.memory_space<vmem>>, %arg29: memref<1x128xf32, #tpu.memory_space<vmem>>, %arg30: memref<16x128xf32, #tpu.memory_space<vmem>>) attributes {dimension_semantics = [], scalar_prefetch = 0 : i64, scratch_operands = 0 : i64, tpu.core_type = #tpu.core_type<tc>} {
    %c0 = arith.constant 0 : index
    %c0_0 = arith.constant 0 : index
    %0 = vector.load %arg0[%c0, %c0_0] : memref<16x4xf32, #tpu.memory_space<vmem>>, vector<16x4xf32>
    %c0_1 = arith.constant 0 : index
    %c0_2 = arith.constant 0 : index
    %1 = vector.load %arg1[%c0_1, %c0_2] : memref<128x6xf32, #tpu.memory_space<vmem>>, vector<128x6xf32>
    %2 = arith.truncf %1 : vector<128x6xf32> to vector<128x6xbf16>
    %c0_3 = arith.constant 0 : index
    %c0_4 = arith.constant 0 : index
    %3 = vector.load %arg2[%c0_3, %c0_4] : memref<1x128xi32, #tpu.memory_space<vmem>>, vector<1x128xi32>
    %c0_5 = arith.constant 0 : index
    %c0_6 = arith.constant 0 : index
    %4 = vector.load %arg3[%c0_5, %c0_6] : memref<128x1xi32, #tpu.memory_space<vmem>>, vector<128x1xi32>
    %5 = tpu.iota {dimensions = array<i32: 0>} : vector<16x128xi32>
    %6 = vector.broadcast %3 : vector<1x128xi32> to vector<16x128xi32>
    %7 = arith.cmpi eq, %5, %6 : vector<16x128xi32>
    %8 = arith.extui %7 : vector<16x128xi1> to vector<16x128xi32>
    %9 = arith.sitofp %8 : vector<16x128xi32> to vector<16x128xf32>
    %10 = arith.truncf %9 : vector<16x128xf32> to vector<16x128xbf16>
    %11 = tpu.iota {dimensions = array<i32: 1>} : vector<128x16xi32>
    %12 = vector.broadcast %4 : vector<128x1xi32> to vector<128x16xi32>
    %13 = arith.cmpi eq, %11, %12 : vector<128x16xi32>
    %14 = arith.extui %13 : vector<128x16xi1> to vector<128x16xi32>
    %15 = arith.sitofp %14 : vector<128x16xi32> to vector<128x16xf32>
    %16 = arith.truncf %15 : vector<128x16xf32> to vector<128x16xbf16>
    %cst = arith.constant 1.000000e+00 : bf16
    %17 = vector.broadcast %cst : bf16 to vector<128x1xbf16>
    %cst_7 = arith.constant dense<0.000000e+00> : vector<16x1xf32>
    %18 = tpu.matmul %10, %17, %cst_7 {dimension_numbers = #tpu.dot_dimension_numbers<[1], [0], [0], [1], [0, 0, 1, 1], [], []>} : vector<16x128xbf16>, vector<128x1xbf16>, vector<16x1xf32> -> vector<16x1xf32>
    %cst_8 = arith.constant 1.000000e+00 : f32
    %19 = vector.broadcast %cst_8 : f32 to vector<16x1xf32>
    %20 = arith.maximumf %18, %19 : vector<16x1xf32>
    %cst_9 = arith.constant 1.000000e+00 : f32
    %21 = vector.broadcast %cst_9 : f32 to vector<16x1xf32>
    %22 = arith.divf %21, %20 : vector<16x1xf32>
    %23 = arith.truncf %0 : vector<16x4xf32> to vector<16x4xbf16>
    %c0_10 = arith.constant 0 : index
    %c0_11 = arith.constant 0 : index
    %24 = vector.load %arg4[%c0_10, %c0_11] : memref<4x128xbf16, #tpu.memory_space<vmem>>, vector<4x128xbf16>
    %cst_12 = arith.constant dense<0.000000e+00> : vector<16x128xf32>
    %25 = tpu.matmul %23, %24, %cst_12 {dimension_numbers = #tpu.dot_dimension_numbers<[1], [0], [0], [1], [0, 0, 1, 1], [], []>} : vector<16x4xbf16>, vector<4x128xbf16>, vector<16x128xf32> -> vector<16x128xf32>
    %c0_13 = arith.constant 0 : index
    %c0_14 = arith.constant 0 : index
    %26 = vector.load %arg5[%c0_13, %c0_14] : memref<1x128xf32, #tpu.memory_space<vmem>>, vector<1x128xf32>
    %27 = vector.broadcast %26 : vector<1x128xf32> to vector<16x128xf32>
    %28 = arith.addf %25, %27 : vector<16x128xf32>
    %cst_15 = arith.constant 0.000000e+00 : f32
    %29 = vector.broadcast %cst_15 : f32 to vector<16x128xf32>
    %30 = arith.maximumf %28, %29 : vector<16x128xf32>
    %31 = arith.truncf %30 : vector<16x128xf32> to vector<16x128xbf16>
    %c0_16 = arith.constant 0 : index
    %c0_17 = arith.constant 0 : index
    %32 = vector.load %arg6[%c0_16, %c0_17] : memref<128x128xbf16, #tpu.memory_space<vmem>>, vector<128x128xbf16>
    %cst_18 = arith.constant dense<0.000000e+00> : vector<16x128xf32>
    %33 = tpu.matmul %31, %32, %cst_18 {dimension_numbers = #tpu.dot_dimension_numbers<[1], [0], [0], [1], [0, 0, 1, 1], [], []>} : vector<16x128xbf16>, vector<128x128xbf16>, vector<16x128xf32> -> vector<16x128xf32>
    %c0_19 = arith.constant 0 : index
    %c0_20 = arith.constant 0 : index
    %34 = vector.load %arg7[%c0_19, %c0_20] : memref<1x128xf32, #tpu.memory_space<vmem>>, vector<1x128xf32>
    %35 = vector.broadcast %34 : vector<1x128xf32> to vector<16x128xf32>
    %36 = arith.addf %33, %35 : vector<16x128xf32>
    %c0_21 = arith.constant 0 : index
    %c0_22 = arith.constant 0 : index
    %37 = vector.load %arg8[%c0_21, %c0_22] : memref<6x128xbf16, #tpu.memory_space<vmem>>, vector<6x128xbf16>
    %cst_23 = arith.constant dense<0.000000e+00> : vector<128x128xf32>
    %38 = tpu.matmul %2, %37, %cst_23 {dimension_numbers = #tpu.dot_dimension_numbers<[1], [0], [0], [1], [0, 0, 1, 1], [], []>} : vector<128x6xbf16>, vector<6x128xbf16>, vector<128x128xf32> -> vector<128x128xf32>
    %c0_24 = arith.constant 0 : index
    %c0_25 = arith.constant 0 : index
    %39 = vector.load %arg9[%c0_24, %c0_25] : memref<1x128xf32, #tpu.memory_space<vmem>>, vector<1x128xf32>
    %40 = vector.broadcast %39 : vector<1x128xf32> to vector<128x128xf32>
    %41 = arith.addf %38, %40 : vector<128x128xf32>
    %cst_26 = arith.constant 0.000000e+00 : f32
    %42 = vector.broadcast %cst_26 : f32 to vector<128x128xf32>
    %43 = arith.maximumf %41, %42 : vector<128x128xf32>
    %44 = arith.truncf %43 : vector<128x128xf32> to vector<128x128xbf16>
    %c0_27 = arith.constant 0 : index
    %c0_28 = arith.constant 0 : index
    %45 = vector.load %arg10[%c0_27, %c0_28] : memref<128x128xbf16, #tpu.memory_space<vmem>>, vector<128x128xbf16>
    %cst_29 = arith.constant dense<0.000000e+00> : vector<128x128xf32>
    %46 = tpu.matmul %44, %45, %cst_29 {dimension_numbers = #tpu.dot_dimension_numbers<[1], [0], [0], [1], [0, 0, 1, 1], [], []>} : vector<128x128xbf16>, vector<128x128xbf16>, vector<128x128xf32> -> vector<128x128xf32>
    %c0_30 = arith.constant 0 : index
    %c0_31 = arith.constant 0 : index
    %47 = vector.load %arg11[%c0_30, %c0_31] : memref<1x128xf32, #tpu.memory_space<vmem>>, vector<1x128xf32>
    %48 = vector.broadcast %47 : vector<1x128xf32> to vector<128x128xf32>
    %49 = arith.addf %46, %48 : vector<128x128xf32>
    %50 = arith.truncf %36 : vector<16x128xf32> to vector<16x128xbf16>
    %cst_32 = arith.constant dense<0.000000e+00> : vector<128x128xf32>
    %51 = tpu.matmul %16, %50, %cst_32 {dimension_numbers = #tpu.dot_dimension_numbers<[1], [0], [0], [1], [0, 0, 1, 1], [], []>} : vector<128x16xbf16>, vector<16x128xbf16>, vector<128x128xf32> -> vector<128x128xf32>
    %52 = arith.addf %51, %49 : vector<128x128xf32>
    %53 = arith.truncf %52 : vector<128x128xf32> to vector<128x128xbf16>
    %c0_33 = arith.constant 0 : index
    %c0_34 = arith.constant 0 : index
    %54 = vector.load %arg12[%c0_33, %c0_34] : memref<128x128xbf16, #tpu.memory_space<vmem>>, vector<128x128xbf16>
    %cst_35 = arith.constant dense<0.000000e+00> : vector<128x128xf32>
    %55 = tpu.matmul %53, %54, %cst_35 {dimension_numbers = #tpu.dot_dimension_numbers<[1], [0], [0], [1], [0, 0, 1, 1], [], []>} : vector<128x128xbf16>, vector<128x128xbf16>, vector<128x128xf32> -> vector<128x128xf32>
    %c0_36 = arith.constant 0 : index
    %c0_37 = arith.constant 0 : index
    %56 = vector.load %arg13[%c0_36, %c0_37] : memref<1x128xf32, #tpu.memory_space<vmem>>, vector<1x128xf32>
    %57 = vector.broadcast %56 : vector<1x128xf32> to vector<128x128xf32>
    %58 = arith.addf %55, %57 : vector<128x128xf32>
    %59 = arith.truncf %58 : vector<128x128xf32> to vector<128x128xbf16>
    %cst_38 = arith.constant dense<0.000000e+00> : vector<16x128xf32>
    %60 = tpu.matmul %10, %59, %cst_38 {dimension_numbers = #tpu.dot_dimension_numbers<[1], [0], [0], [1], [0, 0, 1, 1], [], []>} : vector<16x128xbf16>, vector<128x128xbf16>, vector<16x128xf32> -> vector<16x128xf32>
    %61 = vector.broadcast %22 : vector<16x1xf32> to vector<16x128xf32>
    %62 = arith.mulf %60, %61 : vector<16x128xf32>
    %63 = arith.truncf %62 : vector<16x128xf32> to vector<16x128xbf16>
    %c0_39 = arith.constant 0 : index
    %c0_40 = arith.constant 0 : index
    %64 = vector.load %arg14[%c0_39, %c0_40] : memref<128x128xbf16, #tpu.memory_space<vmem>>, vector<128x128xbf16>
    %cst_41 = arith.constant dense<0.000000e+00> : vector<16x128xf32>
    %65 = tpu.matmul %63, %64, %cst_41 {dimension_numbers = #tpu.dot_dimension_numbers<[1], [0], [0], [1], [0, 0, 1, 1], [], []>} : vector<16x128xbf16>, vector<128x128xbf16>, vector<16x128xf32> -> vector<16x128xf32>
    %c0_42 = arith.constant 0 : index
    %c0_43 = arith.constant 0 : index
    %66 = vector.load %arg15[%c0_42, %c0_43] : memref<1x128xf32, #tpu.memory_space<vmem>>, vector<1x128xf32>
    %67 = vector.broadcast %66 : vector<1x128xf32> to vector<16x128xf32>
    %68 = arith.addf %65, %67 : vector<16x128xf32>
    %69 = arith.truncf %68 : vector<16x128xf32> to vector<16x128xbf16>
    %c0_44 = arith.constant 0 : index
    %c0_45 = arith.constant 0 : index
    %70 = vector.load %arg16[%c0_44, %c0_45] : memref<128x128xbf16, #tpu.memory_space<vmem>>, vector<128x128xbf16>
    %cst_46 = arith.constant dense<0.000000e+00> : vector<16x128xf32>
    %71 = tpu.matmul %69, %70, %cst_46 {dimension_numbers = #tpu.dot_dimension_numbers<[1], [0], [0], [1], [0, 0, 1, 1], [], []>} : vector<16x128xbf16>, vector<128x128xbf16>, vector<16x128xf32> -> vector<16x128xf32>
    %c0_47 = arith.constant 0 : index
    %c0_48 = arith.constant 0 : index
    %72 = vector.load %arg17[%c0_47, %c0_48] : memref<1x128xf32, #tpu.memory_space<vmem>>, vector<1x128xf32>
    %73 = vector.broadcast %72 : vector<1x128xf32> to vector<16x128xf32>
    %74 = arith.addf %71, %73 : vector<16x128xf32>
    %cst_49 = arith.constant 0.000000e+00 : f32
    %75 = vector.broadcast %cst_49 : f32 to vector<16x128xf32>
    %76 = arith.maximumf %74, %75 : vector<16x128xf32>
    %77 = arith.truncf %76 : vector<16x128xf32> to vector<16x128xbf16>
    %c0_50 = arith.constant 0 : index
    %c0_51 = arith.constant 0 : index
    %78 = vector.load %arg18[%c0_50, %c0_51] : memref<128x128xbf16, #tpu.memory_space<vmem>>, vector<128x128xbf16>
    %cst_52 = arith.constant dense<0.000000e+00> : vector<16x128xf32>
    %79 = tpu.matmul %77, %78, %cst_52 {dimension_numbers = #tpu.dot_dimension_numbers<[1], [0], [0], [1], [0, 0, 1, 1], [], []>} : vector<16x128xbf16>, vector<128x128xbf16>, vector<16x128xf32> -> vector<16x128xf32>
    %c0_53 = arith.constant 0 : index
    %c0_54 = arith.constant 0 : index
    %80 = vector.load %arg19[%c0_53, %c0_54] : memref<1x128xf32, #tpu.memory_space<vmem>>, vector<1x128xf32>
    %81 = vector.broadcast %80 : vector<1x128xf32> to vector<16x128xf32>
    %82 = arith.addf %79, %81 : vector<16x128xf32>
    %c0_55 = arith.constant 0 : index
    %c0_56 = arith.constant 0 : index
    %83 = vector.load %arg20[%c0_55, %c0_56] : memref<6x128xbf16, #tpu.memory_space<vmem>>, vector<6x128xbf16>
    %cst_57 = arith.constant dense<0.000000e+00> : vector<128x128xf32>
    %84 = tpu.matmul %2, %83, %cst_57 {dimension_numbers = #tpu.dot_dimension_numbers<[1], [0], [0], [1], [0, 0, 1, 1], [], []>} : vector<128x6xbf16>, vector<6x128xbf16>, vector<128x128xf32> -> vector<128x128xf32>
    %c0_58 = arith.constant 0 : index
    %c0_59 = arith.constant 0 : index
    %85 = vector.load %arg21[%c0_58, %c0_59] : memref<1x128xf32, #tpu.memory_space<vmem>>, vector<1x128xf32>
    %86 = vector.broadcast %85 : vector<1x128xf32> to vector<128x128xf32>
    %87 = arith.addf %84, %86 : vector<128x128xf32>
    %cst_60 = arith.constant 0.000000e+00 : f32
    %88 = vector.broadcast %cst_60 : f32 to vector<128x128xf32>
    %89 = arith.maximumf %87, %88 : vector<128x128xf32>
    %90 = arith.truncf %89 : vector<128x128xf32> to vector<128x128xbf16>
    %c0_61 = arith.constant 0 : index
    %c0_62 = arith.constant 0 : index
    %91 = vector.load %arg22[%c0_61, %c0_62] : memref<128x128xbf16, #tpu.memory_space<vmem>>, vector<128x128xbf16>
    %cst_63 = arith.constant dense<0.000000e+00> : vector<128x128xf32>
    %92 = tpu.matmul %90, %91, %cst_63 {dimension_numbers = #tpu.dot_dimension_numbers<[1], [0], [0], [1], [0, 0, 1, 1], [], []>} : vector<128x128xbf16>, vector<128x128xbf16>, vector<128x128xf32> -> vector<128x128xf32>
    %c0_64 = arith.constant 0 : index
    %c0_65 = arith.constant 0 : index
    %93 = vector.load %arg23[%c0_64, %c0_65] : memref<1x128xf32, #tpu.memory_space<vmem>>, vector<1x128xf32>
    %94 = vector.broadcast %93 : vector<1x128xf32> to vector<128x128xf32>
    %95 = arith.addf %92, %94 : vector<128x128xf32>
    %96 = arith.truncf %82 : vector<16x128xf32> to vector<16x128xbf16>
    %cst_66 = arith.constant dense<0.000000e+00> : vector<128x128xf32>
    %97 = tpu.matmul %16, %96, %cst_66 {dimension_numbers = #tpu.dot_dimension_numbers<[1], [0], [0], [1], [0, 0, 1, 1], [], []>} : vector<128x16xbf16>, vector<16x128xbf16>, vector<128x128xf32> -> vector<128x128xf32>
    %98 = arith.addf %97, %95 : vector<128x128xf32>
    %99 = arith.truncf %98 : vector<128x128xf32> to vector<128x128xbf16>
    %c0_67 = arith.constant 0 : index
    %c0_68 = arith.constant 0 : index
    %100 = vector.load %arg24[%c0_67, %c0_68] : memref<128x128xbf16, #tpu.memory_space<vmem>>, vector<128x128xbf16>
    %cst_69 = arith.constant dense<0.000000e+00> : vector<128x128xf32>
    %101 = tpu.matmul %99, %100, %cst_69 {dimension_numbers = #tpu.dot_dimension_numbers<[1], [0], [0], [1], [0, 0, 1, 1], [], []>} : vector<128x128xbf16>, vector<128x128xbf16>, vector<128x128xf32> -> vector<128x128xf32>
    %c0_70 = arith.constant 0 : index
    %c0_71 = arith.constant 0 : index
    %102 = vector.load %arg25[%c0_70, %c0_71] : memref<1x128xf32, #tpu.memory_space<vmem>>, vector<1x128xf32>
    %103 = vector.broadcast %102 : vector<1x128xf32> to vector<128x128xf32>
    %104 = arith.addf %101, %103 : vector<128x128xf32>
    %105 = arith.truncf %104 : vector<128x128xf32> to vector<128x128xbf16>
    %cst_72 = arith.constant dense<0.000000e+00> : vector<16x128xf32>
    %106 = tpu.matmul %10, %105, %cst_72 {dimension_numbers = #tpu.dot_dimension_numbers<[1], [0], [0], [1], [0, 0, 1, 1], [], []>} : vector<16x128xbf16>, vector<128x128xbf16>, vector<16x128xf32> -> vector<16x128xf32>
    %107 = vector.broadcast %22 : vector<16x1xf32> to vector<16x128xf32>
    %108 = arith.mulf %106, %107 : vector<16x128xf32>
    %109 = arith.truncf %108 : vector<16x128xf32> to vector<16x128xbf16>
    %c0_73 = arith.constant 0 : index
    %c0_74 = arith.constant 0 : index
    %110 = vector.load %arg26[%c0_73, %c0_74] : memref<128x128xbf16, #tpu.memory_space<vmem>>, vector<128x128xbf16>
    %cst_75 = arith.constant dense<0.000000e+00> : vector<16x128xf32>
    %111 = tpu.matmul %109, %110, %cst_75 {dimension_numbers = #tpu.dot_dimension_numbers<[1], [0], [0], [1], [0, 0, 1, 1], [], []>} : vector<16x128xbf16>, vector<128x128xbf16>, vector<16x128xf32> -> vector<16x128xf32>
    %c0_76 = arith.constant 0 : index
    %c0_77 = arith.constant 0 : index
    %112 = vector.load %arg27[%c0_76, %c0_77] : memref<1x128xf32, #tpu.memory_space<vmem>>, vector<1x128xf32>
    %113 = vector.broadcast %112 : vector<1x128xf32> to vector<16x128xf32>
    %114 = arith.addf %111, %113 : vector<16x128xf32>
    %115 = arith.truncf %114 : vector<16x128xf32> to vector<16x128xbf16>
    %c0_78 = arith.constant 0 : index
    %c0_79 = arith.constant 0 : index
    %116 = vector.load %arg28[%c0_78, %c0_79] : memref<128x128xbf16, #tpu.memory_space<vmem>>, vector<128x128xbf16>
    %cst_80 = arith.constant dense<0.000000e+00> : vector<16x128xf32>
    %117 = tpu.matmul %115, %116, %cst_80 {dimension_numbers = #tpu.dot_dimension_numbers<[1], [0], [0], [1], [0, 0, 1, 1], [], []>} : vector<16x128xbf16>, vector<128x128xbf16>, vector<16x128xf32> -> vector<16x128xf32>
    %c0_81 = arith.constant 0 : index
    %c0_82 = arith.constant 0 : index
    %118 = vector.load %arg29[%c0_81, %c0_82] : memref<1x128xf32, #tpu.memory_space<vmem>>, vector<1x128xf32>
    %119 = vector.broadcast %118 : vector<1x128xf32> to vector<16x128xf32>
    %120 = arith.addf %117, %119 : vector<16x128xf32>
    %c0_83 = arith.constant 0 : index
    %c0_84 = arith.constant 0 : index
    %121 = vector.load %arg30[%c0_83, %c0_84] : memref<16x128xf32, #tpu.memory_space<vmem>>, vector<16x128xf32>
    tpu.vector_store %arg30[%c0_83, %c0_84], %120 {strides = array<i32>} : memref<16x128xf32, #tpu.memory_space<vmem>>, vector<16x128xf32>,
    return
  }
}

</mosaic_0001>

<bundles_post_ra>
// kernel: mpnn_forward.1
= control target key start
LH: loop header
LB: loop body
LE: loop exit
PB: predicated region body
PF: predicated region fallthrough
CT: control target
= control target key end

     0   :  { %s3790_s6 = smov 1   ;;  %s3791_s10 = smov 2   ;;  %s4405_s0 = inlined_call_operand.smem [shape: u32[31], index: -1, kind: input, shape index: {}] }
   0x1   :  { %s3850_s5 = sld [smem:[%s4405_s0]]   ;;  %s3792_s14 = smov 3  }
   0x2   :  { %s3855_s9 = sld [smem:[%s4405_s0 + %s3790_s6]]   ;;  %s3793_s18 = smov 4  }
   0x3   :  { %s3860_s13 = sld [smem:[%s4405_s0 + %s3791_s10]]   ;;  %s3794_s22 = smov 5  }
   0x4   :  { %s3865_s17 = sld [smem:[%s4405_s0 + %s3792_s14]]   ;;  %s3795_s26 = smov 6  }
   0x5   :  { %s3870_s21 = sld [smem:[%s4405_s0 + %s3793_s18]]   ;;  %s3796_s30 = smov 7  }
   0x6   :  { %s3875_s25 = sld [smem:[%s4405_s0 + %s3794_s22]]   ;;  %s3797_s4 = smov 8  }
   0x7   :  { %4415 = sst [smem:[#allocation33_spill]] %s3850_s5  ;;  %s3798_s10 = smov 9  }
   0x8   :  { %4416 = sst [smem:[#allocation34_spill]] %s3855_s9  ;;  %s3799_s15 = smov 10  }
   0x9   :  { %4417 = sst [smem:[#allocation35_spill]] %s3860_s13  ;;  %s3800_s20 = smov 11  }
   0xa   :  { %4418 = sst [smem:[#allocation36_spill]] %s3865_s17  ;;  %s3802_s1 = smov 13  }
   0xb   :  { %s3880_s29 = sld [smem:[%s4405_s0 + %s3795_s26]]   ;;  %s3801_s26 = smov 12  }
   0xc   :  { %s3885_s3 = sld [smem:[%s4405_s0 + %s3796_s30]]   ;;  %s3803_s7 = smov 14  }
   0xd   :  { %s3890_s8 = sld [smem:[%s4405_s0 + %s3797_s4]]   ;;  %s3805_s22 = smov 16  }
   0xe   :  { %s3895_s14 = sld [smem:[%s4405_s0 + %s3798_s10]]   ;;  %s3806_s28 = smov 17  }
   0xf   :  { %s3900_s19 = sld [smem:[%s4405_s0 + %s3799_s15]]   ;;  %s3804_s15 = smov 15  }
  0x10   :  { %s3905_s24 = sld [smem:[%s4405_s0 + %s3800_s20]]  }
  0x11   :  { %4419 = sst [smem:[#allocation37_spill]] %s3880_s29 }
  0x12   :  { %s3910_s30 = sld [smem:[%s4405_s0 + %s3801_s26]]  }
  0x13   :  { %4420 = sst [smem:[#allocation38_spill]] %s3890_s8 }
  0x14   :  { %s3915_s6 = sld [smem:[%s4405_s0 + %s3802_s1]]  }
  0x15   :  { %4421 = sst [smem:[#allocation39_spill]] %s3900_s19 }
  0x16   :  { %s3920_s12 = sld [smem:[%s4405_s0 + %s3803_s7]]   ;;  %s3807_s7 = smov 18  }
  0x17   :  { %s3925_s20 = sld [smem:[%s4405_s0 + %s3804_s15]]   ;;  %s3808_s15 = smov 19  }
  0x18   :  { %4422 = sst [smem:[#allocation40_spill]] %s3910_s30 }
  0x19   :  { %s3930_s27 = sld [smem:[%s4405_s0 + %s3805_s22]]   ;;  %s3809_s22 = smov 20  }
  0x1a   :  { %s3935_s4 = sld [smem:[%s4405_s0 + %s3806_s28]]   ;;  %s3810_s28 = smov 21  }
  0x1b   :  { %s3945_s30 = sld [smem:[%s4405_s0 + %s3808_s15]]   ;;  %s3812_s15 = smov 23  }
  0x1c   :  { %4423 = sst [smem:[#allocation41_spill]] %s3920_s12 }
  0x1d   :  { %s3940_s12 = sld [smem:[%s4405_s0 + %s3807_s7]]   ;;  %s3811_s7 = smov 22  }
  0x1f   :  { %4424 = sst [smem:[#allocation42_spill]] %s3930_s27 }
  0x20   :  { %4425 = sst [smem:[#allocation43_spill]] %s3935_s4 }
  0x21   :  { %4427 = sst [smem:[#allocation45_spill]] %s3945_s30 }
  0x22   :  { %s3950_s27 = sld [smem:[%s4405_s0 + %s3809_s22]]   ;;  %s3813_s22 = smov 24  }
  0x23   :  { %4426 = sst [smem:[#allocation44_spill]] %s3940_s12 }
  0x24   :  { %s3955_s4 = sld [smem:[%s4405_s0 + %s3810_s28]]   ;;  %s3814_s28 = smov 25  }
  0x25   :  { %s3960_s12 = sld [smem:[%s4405_s0 + %s3811_s7]]   ;;  %s3815_s7 = smov 26  }
  0x26   :  { %s3965_s30 = sld [smem:[%s4405_s0 + %s3812_s15]]   ;;  %s3816_s15 = smov 27  }
  0x27   :  { %s3970_s19 = sld [smem:[%s4405_s0 + %s3813_s22]]   ;;  %s3817_s22 = smov 28  }
  0x28   :  { %s3975_s17 = sld [smem:[%s4405_s0 + %s3814_s28]]   ;;  %s3818_s28 = smov 29  }
  0x29   :  { %s3980_s9 = sld [smem:[%s4405_s0 + %s3815_s7]]   ;;  %s3819_s7 = smov 30  }
  0x2a   :  { %s3985_s8 = sld [smem:[%s4405_s0 + %s3816_s15]]  }
  0x2b   :  { %s3990_s13 = sld [smem:[%s4405_s0 + %s3817_s22]]  }
  0x2c   :  { %s3995_s29 = sld [smem:[%s4405_s0 + %s3818_s28]]  }
  0x2d   :  { %s4000_s5 = sld [smem:[%s4405_s0 + %s3819_s7]]  }
  0x2e   :  { %66 = vsyncpa [#allocation3], 0 }
  0x2f   :  { %67 = vsyncpa [#allocation5], 0 }
  0x30   :  { %68 = vsyncpa [#allocation8], 0 }
  0x31   :  { %69 = vsyncpa [#allocation11], 0 }
  0x32   :  { %70 = vsyncpa [#allocation14], 0 }
  0x33   :  { %71 = vsyncpa [#allocation17], 0 }
  0x34   :  { %72 = vsyncpa [#allocation20], 0 }
  0x35   :  { %73 = vsyncpa [#allocation23], 0  ;;  %s3820_s15 = smov [#allocation4]   ;;  %s3821_s18 = smov [#allocation7]  }
  0x36   :  { %s98_s16 = sshll.u32 %s3820_s15, 4  ;;  %s122_s22 = sshll.u32 %s3821_s18, 4  ;;  %s99_s16 = int_to_ptr.vmem [resolvable:$true] %s98_s16  ;;  %s123_s22 = int_to_ptr.vmem [resolvable:$true] %s122_s22 }
  0x37   :  { %s3482_s23 = scalar_lea.vmem %s99_s16, 16  ;;  %s3486_s26 = scalar_lea.vmem %s99_s16, 32 }
  0x38   :  { %p3483_p0 = scmp.ne.s32.totalorder %s99_s16, %s3482_s23  ;;  %p3487_p1 = scmp.lt.s32.totalorder %s99_s16, %s99_s16 }
  0x39   :  { %p3488_p2 = scmp.lt.s32.totalorder %s3486_s26, %s3482_s23 }
  0x3b   :  { %p3489_p3 = por %p3488_p2, %p3487_p1 }
  0x3d   :  { %p3490_p4 = pnand %p3489_p3, %p3483_p0 }
  0x3f   :  { %3493 = shalt.err (!%p3490_p4)
}
  0x40   :  { %101 = dma.hbm_to_vmem [thread:$0]  %s3875_s25, 16, %s99_s16, [#allocation5]  }
  0x41   :  { %s3502_s0 = scalar_lea.vmem %s123_s22, 16  ;;  %s3506_s28 = scalar_lea.vmem %s123_s22, 32 }
  0x42   :  { %p3503_p5 = scmp.ne.s32.totalorder %s123_s22, %s3502_s0  ;;  %p3507_p6 = scmp.lt.s32.totalorder %s123_s22, %s123_s22 }
  0x43   :  { %p3508_p7 = scmp.lt.s32.totalorder %s3506_s28, %s3502_s0 }
  0x45   :  { %p3509_p8 = por %p3508_p7, %p3507_p6 }
  0x47   :  { %p3510_p9 = pnand %p3509_p8, %p3503_p5 }
  0x49   :  { %3513 = shalt.err (!%p3510_p9)
}
  0x4a   :  { %125 = dma.hbm_to_vmem [thread:$0]  %s3895_s14, 16, %s123_s22, [#allocation8]  }
  0x4b   :  { %s3822_s1 = smov [#allocation10]   ;;  %s3823_s7 = smov [#allocation13]  }
  0x4c   :  { %s146_s2 = sshll.u32 %s3822_s1, 4  ;;  %s176_s10 = sshll.u32 %s3823_s7, 4  ;;  %s147_s2 = int_to_ptr.vmem [resolvable:$true] %s146_s2  ;;  %s177_s10 = int_to_ptr.vmem [resolvable:$true] %s176_s10 }
  0x4d   :  { %s3522_s11 = scalar_lea.vmem %s147_s2, 16  ;;  %s3526_s15 = scalar_lea.vmem %s147_s2, 32 }
  0x4e   :  { %p3523_p10 = scmp.ne.s32.totalorder %s147_s2, %s3522_s11  ;;  %p3527_p11 = scmp.lt.s32.totalorder %s147_s2, %s147_s2 }
  0x4f   :  { %p3528_p12 = scmp.lt.s32.totalorder %s3526_s15, %s3522_s11 }
  0x51   :  { %p3529_p13 = por %p3528_p12, %p3527_p11 }
  0x53   :  { %p3530_p0 = pnand %p3529_p13, %p3523_p10 }
  0x55   :  { %3533 = shalt.err (!%p3530_p0)
}
  0x56   :  { %149 = dma.hbm_to_vmem [thread:$0]  %s3915_s6, 16, %s147_s2, [#allocation11]  }
  0x57   :  { %s3542_s25 = scalar_lea.vmem %s177_s10, 64  ;;  %p3547_p2 = scmp.lt.s32.totalorder %s177_s10, %s177_s10 }
  0x58   :  { %p3543_p1 = scmp.ne.s32.totalorder %s177_s10, %s3542_s25  ;;  %p3548_p3 = scmp.lt.s32.totalorder %s3542_s25, %s3542_s25 }
  0x5a   :  { %p3549_p4 = por %p3548_p3, %p3547_p2 }
  0x5c   :  { %p3550_p5 = pnand %p3549_p4, %p3543_p1 }
  0x5e   :  { %3553 = shalt.err (!%p3550_p5)
}
  0x5f   :  { %179 = dma.hbm_to_vmem [thread:$0]  %s3950_s27, 64, %s177_s10, [#allocation14]  }
  0x60   :  { %s3824_s14 = smov [#allocation16]  }
  0x61   :  { %s195_s16 = sshll.u32 %s3824_s14, 4  ;;  %s196_s16 = int_to_ptr.vmem [resolvable:$true] %s195_s16 }
  0x62   :  { %s3562_s18 = scalar_lea.vmem %s196_s16, 1024  ;;  %p3567_p7 = scmp.lt.s32.totalorder %s196_s16, %s196_s16 }
  0x63   :  { %p3563_p6 = scmp.ne.s32.totalorder %s196_s16, %s3562_s18  ;;  %p3568_p8 = scmp.lt.s32.totalorder %s3562_s18, %s3562_s18 }
  0x65   :  { %p3569_p9 = por %p3568_p8, %p3567_p7 }
  0x67   :  { %p3570_p10 = pnand %p3569_p9, %p3563_p6 }
  0x69   :  { %3573 = shalt.err (!%p3570_p10)
}
  0x6a   :  { %s3825_s6 = smov 64   ;;  %s3826_s22 = smov 4  }
  0x6b   :  { %201 = dma.hbm_to_vmem [thread:$0]  %s3960_s12, 1024, %s196_s16, [#allocation17], %s3825_s6, %s3825_s6, %s3826_s22  }
  0x6c   :  { %s3827_s23 = smov [#allocation19]   ;;  %s3828_s27 = smov [#allocation22]  }
  0x6d   :  { %s217_s26 = sshll.u32 %s3827_s23, 4  ;;  %s239_s0 = sshll.u32 %s3828_s27, 4  ;;  %s218_s26 = int_to_ptr.vmem [resolvable:$true] %s217_s26  ;;  %s240_s0 = int_to_ptr.vmem [resolvable:$true] %s239_s0 }
  0x6e   :  { %s3582_s28 = scalar_lea.vmem %s218_s26, 1024  ;;  %p3587_p12 = scmp.lt.s32.totalorder %s218_s26, %s218_s26 }
  0x6f   :  { %p3583_p11 = scmp.ne.s32.totalorder %s218_s26, %s3582_s28  ;;  %p3588_p13 = scmp.lt.s32.totalorder %s3582_s28, %s3582_s28 }
  0x71   :  { %p3589_p0 = por %p3588_p13, %p3587_p12 }
  0x73   :  { %p3590_p1 = pnand %p3589_p0, %p3583_p11 }
  0x75   :  { %3593 = shalt.err (!%p3590_p1)
}
  0x76   :  { %223 = dma.hbm_to_vmem [thread:$0]  %s3970_s19, 1024, %s218_s26, [#allocation20], %s3825_s6, %s3825_s6, %s3826_s22  }
  0x77   :  { %s3602_s1 = scalar_lea.vmem %s240_s0, 1024  ;;  %p3607_p3 = scmp.lt.s32.totalorder %s240_s0, %s240_s0 }
  0x78   :  { %p3603_p2 = scmp.ne.s32.totalorder %s240_s0, %s3602_s1  ;;  %p3608_p4 = scmp.lt.s32.totalorder %s3602_s1, %s3602_s1 }
  0x7a   :  { %p3609_p5 = por %p3608_p4, %p3607_p3 }
  0x7c   :  { %p3610_p6 = pnand %p3609_p5, %p3603_p2 }
  0x7e   :  { %3613 = shalt.err (!%p3610_p6)
}
  0x7f   :  { %245 = dma.hbm_to_vmem [thread:$0]  %s3980_s9, 1024, %s240_s0, [#allocation23], %s3825_s6, %s3825_s6, %s3826_s22  }
  0x80   :  { %s3829_s12 = smov [#allocation2]   ;;  %s3830_s7 = smov [#allocation6]  }
  0x81   :  { %s88_s2 = sshll.u32 %s3829_s12, 4  ;;  %s110_s10 = sshll.u32 %s3830_s7, 4  ;;  %s89_s2 = int_to_ptr.vmem [resolvable:$true] %s88_s2  ;;  %s111_s10 = int_to_ptr.vmem [resolvable:$true] %s110_s10 }
  0x82   :  { %s3622_s11 = scalar_lea.vmem %s89_s2, 32  ;;  %p3627_p8 = scmp.lt.s32.totalorder %s89_s2, %s89_s2 }
  0x83   :  { %p3623_p7 = scmp.ne.s32.totalorder %s89_s2, %s3622_s11  ;;  %p3628_p9 = scmp.lt.s32.totalorder %s3622_s11, %s3622_s11 }
  0x85   :  { %p3629_p10 = por %p3628_p9, %p3627_p8 }
  0x87   :  { %p3630_p11 = pnand %p3629_p10, %p3623_p7 }
  0x89   :  { %3633 = shalt.err (!%p3630_p11)
}
  0x8a   :  { %91 = dma.hbm_to_vmem [thread:$0]  %s3870_s21, 32, %s89_s2, [#allocation3]  }
  0x8b   :  { %s3642_s19 = scalar_lea.vmem %s111_s10, 16  ;;  %s3646_s15 = scalar_lea.vmem %s111_s10, 32 }
  0x8c   :  { %p3643_p12 = scmp.ne.s32.totalorder %s111_s10, %s3642_s19  ;;  %p3647_p13 = scmp.lt.s32.totalorder %s111_s10, %s111_s10 }
  0x8d   :  { %p3648_p0 = scmp.lt.s32.totalorder %s3646_s15, %s3642_s19 }
  0x8f   :  { %p3649_p1 = por %p3648_p0, %p3647_p13 }
  0x91   :  { %p3650_p2 = pnand %p3649_p1, %p3643_p12 }
  0x93   :  { %3653 = shalt.err (!%p3650_p2)
}
  0x94   :  { %113 = dma.hbm_to_vmem [thread:$0]  %s3885_s3, 16, %s111_s10, [#allocation5]  }
  0x95   :  { %s3831_s9 = smov [#allocation9]   ;;  %s3832_s14 = smov [#allocation12]  }
  0x96   :  { %s134_s25 = sshll.u32 %s3831_s9, 4  ;;  %s158_s16 = sshll.u32 %s3832_s14, 4  ;;  %s135_s25 = int_to_ptr.vmem [resolvable:$true] %s134_s25  ;;  %s159_s16 = int_to_ptr.vmem [resolvable:$true] %s158_s16 }
  0x97   :  { %s3662_s18 = scalar_lea.vmem %s135_s25, 16  ;;  %s3666_s23 = scalar_lea.vmem %s135_s25, 32 }
  0x98   :  { %p3663_p3 = scmp.ne.s32.totalorder %s135_s25, %s3662_s18  ;;  %p3667_p4 = scmp.lt.s32.totalorder %s135_s25, %s135_s25 }
  0x99   :  { %p3668_p5 = scmp.lt.s32.totalorder %s3666_s23, %s3662_s18 }
  0x9b   :  { %p3669_p6 = por %p3668_p5, %p3667_p4 }
  0x9d   :  { %p3670_p7 = pnand %p3669_p6, %p3663_p3 }
  0x9f   :  { %3673 = shalt.err (!%p3670_p7)
}
  0xa0   :  { %137 = dma.hbm_to_vmem [thread:$0]  %s3905_s24, 16, %s135_s25, [#allocation8]  }
  0xa1   :  { %s3682_s21 = scalar_lea.vmem %s159_s16, 16  ;;  %s3686_s26 = scalar_lea.vmem %s159_s16, 32 }
  0xa2   :  { %p3683_p8 = scmp.ne.s32.totalorder %s159_s16, %s3682_s21  ;;  %p3687_p9 = scmp.lt.s32.totalorder %s159_s16, %s159_s16 }
  0xa3   :  { %p3688_p10 = scmp.lt.s32.totalorder %s3686_s26, %s3682_s21 }
  0xa5   :  { %p3689_p11 = por %p3688_p10, %p3687_p9 }
  0xa7   :  { %p3690_p12 = pnand %p3689_p11, %p3683_p8 }
  0xa9   :  { %3693 = shalt.err (!%p3690_p12)
}
  0xaa   :  { %161 = dma.hbm_to_vmem [thread:$0]  %s3925_s20, 16, %s159_s16, [#allocation11]  }
  0xab   :  { %s3833_s3 = smov [#allocation15]   ;;  %s3834_s0 = smov [#allocation18]  }
  0xac   :  { %s186_s27 = sshll.u32 %s3833_s3, 4  ;;  %s208_s28 = sshll.u32 %s3834_s0, 4  ;;  %s187_s27 = int_to_ptr.vmem [resolvable:$true] %s186_s27  ;;  %s209_s28 = int_to_ptr.vmem [resolvable:$true] %s208_s28 }
  0xad   :  { %s3702_s1 = scalar_lea.vmem %s187_s27, 16  ;;  %s3706_s12 = scalar_lea.vmem %s187_s27, 32 }
  0xae   :  { %p3703_p13 = scmp.ne.s32.totalorder %s187_s27, %s3702_s1  ;;  %p3707_p0 = scmp.lt.s32.totalorder %s187_s27, %s187_s27 }
  0xaf   :  { %p3708_p1 = scmp.lt.s32.totalorder %s3706_s12, %s3702_s1 }
  0xb1   :  { %p3709_p2 = por %p3708_p1, %p3707_p0 }
  0xb3   :  { %p3710_p3 = pnand %p3709_p2, %p3703_p13 }
  0xb5   :  { %3713 = shalt.err (!%p3710_p3)
}
  0xb6   :  { %189 = dma.hbm_to_vmem [thread:$0]  %s3955_s4, 16, %s187_s27, [#allocation14]  }
  0xb7   :  { %s3722_s24 = scalar_lea.vmem %s209_s28, 16  ;;  %s3726_s2 = scalar_lea.vmem %s209_s28, 32 }
  0xb8   :  { %p3723_p4 = scmp.ne.s32.totalorder %s209_s28, %s3722_s24  ;;  %p3727_p5 = scmp.lt.s32.totalorder %s209_s28, %s209_s28 }
  0xb9   :  { %p3728_p6 = scmp.lt.s32.totalorder %s3726_s2, %s3722_s24 }
  0xbb   :  { %p3729_p7 = por %p3728_p6, %p3727_p5 }
  0xbd   :  { %p3730_p8 = pnand %p3729_p7, %p3723_p4 }
  0xbf   :  { %3733 = shalt.err (!%p3730_p8)
}
  0xc0   :  { %211 = dma.hbm_to_vmem [thread:$0]  %s3965_s30, 16, %s209_s28, [#allocation17]  }
  0xc1   :  { %s3835_s20 = smov [#allocation21]   ;;  %s3836_s10 = smov [#allocation24]  }
  0xc2   :  { %s230_s7 = sshll.u32 %s3835_s20, 4  ;;  %s253_s11 = sshll.u32 %s3836_s10, 4  ;;  %s231_s7 = int_to_ptr.vmem [resolvable:$true] %s230_s7  ;;  %s254_s11 = int_to_ptr.vmem [resolvable:$true] %s253_s11 }
  0xc3   :  { %s3742_s19 = scalar_lea.vmem %s231_s7, 16  ;;  %s3746_s15 = scalar_lea.vmem %s231_s7, 32 }
  0xc4   :  { %p3743_p9 = scmp.ne.s32.totalorder %s231_s7, %s3742_s19  ;;  %p3747_p10 = scmp.lt.s32.totalorder %s231_s7, %s231_s7 }
  0xc5   :  { %p3748_p11 = scmp.lt.s32.totalorder %s3746_s15, %s3742_s19 }
  0xc7   :  { %p3749_p12 = por %p3748_p11, %p3747_p10 }
  0xc9   :  { %p3750_p13 = pnand %p3749_p12, %p3743_p9 }
  0xcb   :  { %3753 = shalt.err (!%p3750_p13)
}
  0xcc   :  { %233 = dma.hbm_to_vmem [thread:$0]  %s3975_s17, 16, %s231_s7, [#allocation20]  }
  0xcd   :  { %s3762_s4 = scalar_lea.vmem %s254_s11, 1024  ;;  %p3767_p1 = scmp.lt.s32.totalorder %s254_s11, %s254_s11 }
  0xce   :  { %p3763_p0 = scmp.ne.s32.totalorder %s254_s11, %s3762_s4  ;;  %p3768_p2 = scmp.lt.s32.totalorder %s3762_s4, %s3762_s4 }
  0xd0   :  { %p3769_p3 = por %p3768_p2, %p3767_p1 }
  0xd2   :  { %p3770_p4 = pnand %p3769_p3, %p3763_p0 }
  0xd4   :  { %3773 = shalt.err (!%p3770_p4)
}
  0xd5   :  { %259 = dma.hbm_to_vmem [thread:$0]  %s3990_s13, 1024, %s254_s11, [#allocation23], %s3825_s6, %s3825_s6, %s3826_s22  }
  0xd6   :  { %3774 = dma.done.wait [#allocation3], 32  }
  0xd7   :  { %3775 = vsyncadd [#allocation3], 4294967264 }
  0xd8   :  { %3776 = dma.done.wait [#allocation5], 32  }
  0xd9   :  { %3777 = vsyncadd [#allocation5], 4294967264 }
  0xda   :  { %3778 = dma.done.wait [#allocation8], 32  }
  0xdb   :  { %3779 = vsyncadd [#allocation8], 4294967264 }
  0xdc   :  { %3780 = dma.done.wait [#allocation11], 32  }
  0xdd   :  { %3781 = vsyncadd [#allocation11], 4294967264 }
  0xde   :  { %3782 = dma.done.wait [#allocation14], 80  }
  0xdf   :  { %3783 = vsyncadd [#allocation14], 4294967216 }
  0xe0   :  { %3784 = dma.done.wait [#allocation17], 1040  }
  0xe1   :  { %3785 = vsyncadd [#allocation17], 4294966256 }
  0xe2   :  { %3786 = dma.done.wait [#allocation20], 1040  }
  0xe3   :  { %3787 = vsyncadd [#allocation20], 4294966256 }
  0xe4   :  { %3788 = dma.done.wait [#allocation23], 2048  }
  0xe5   :  { %3789 = vsyncadd [#allocation23], 4294965248  ;;  %s4428_s17 = sld [smem:[#allocation33_spill]]  ;;  %v3837_v0 = vmov 0.0   ;;  %vm3838_vm0 = vmmov 0   ;;  %v352_v2 = vlaneseq  ;;  %vm532_vm1 = vcmask 1041408  }
  0xe6   :  { %2968 = vmatprep.subr.bf16.mxu1 %v3837_v0  ;;  %2970 = vmatprep.mubr.msk.bf16.mxu1 %vm3838_vm0, %v3837_v0  ;;  %s4429_s13 = sld [smem:[#allocation37_spill]]  ;;  %v3839_v1 = vmov 1065369472   ;;  %v520_v3 = vld [vmem:[#allocation2] sm:$0x3]  ;;  %vm528_vm2 = vcmask 31744  }
  0xe7   :  { %2948 = vmatprep.subr.bf16.mxu0 %v3837_v0  ;;  %2964 = vmatprep.mubr.msk.bf16.mxu0 %vm3838_vm0, %v3837_v0  ;;  %v534_v6 = vsel %vm532_vm1, %v520_v3, 0  ;;  %s4430_s30 = sld [smem:[#allocation35_spill]]  ;;  %v353_v8 = vshrl.u32 %v352_v2, 7  ;;  %v3840_v17 = vmov 1.0|1.0   ;;  %vm725_vm6 = vcmask 1042432  }
  0xe8   :  { %2949 = vmatpush3.bf16.msra.mxu0 %v3839_v1  ;;  %2969 = vmatpush3.bf16.msra.mxu1 %v534_v6  ;;  %s4431_s6 = sld [smem:[#allocation38_spill]]  ;;  %vm700_vm7 = vcmask 48128   ;;  %v3841_v46 = vmov 0   ;;  %v2635_v3 = vld [vmem:[#allocation4] ss:$0 sm:$0xff]  ;;  %vm1019_vm10 = vcmask 130048  }
  0xe9   :  { %2950 = vmatprep.subr.bf16.mxu0 %v3837_v0  ;;  %2974 = vmatprep.subr.bf16.mxu1 %v3837_v0  ;;  %v354_v10 = vadd.s32 8, %v353_v8  ;;  %s4434_s22 = sld [smem:[#allocation34_spill]]  ;;  %v3465_v15 = vld [vmem:[#allocation24 + $0x20] sm:$0xff]  }
  0xea   :  { %s4435_s9 = sld [smem:[#allocation36_spill]]  ;;  %3388 = vset.pattern.permute.xlu0 %v3841_v46  ;;  %3389 = vset.pattern.permute.xlu1 %v3841_v46 }
  0xeb   :  { %v309_v4 = vld [vmem:[%s4428_s17] sm:$0xff]  ;;  %v310_v5 = vld [vmem:[%s4428_s17 + $0x8] sm:$0xff]  ;;  %s4436_s25 = sld [smem:[#allocation39_spill]] }
  0xec   :  { %2951 = vmatpush3.bf16.msra.mxu0 %v3839_v1  ;;  %v519_v7 = vpack.c.bf16 %v310_v5, %v309_v4  ;;  %v3390_v9 = vld [vmem:[%s4429_s13 + $0x38] sm:$0xff]   ;;  %v3391_v11 = vld [vmem:[%s4429_s13 + $0x30] sm:$0xff]   ;;  %v3392_v13 = vld [vmem:[%s4429_s13 + $0x28] sm:$0xff]   ;;  %s4437_s14 = sld [smem:[#allocation40_spill]] }
  0xed   :  { %2952 = vmatprep.subr.bf16.mxu0 %v3837_v0  ;;  %v2614_v12 = vld [vmem:[%s4430_s30] ss:$0 sm:$0xff]  ;;  %v3394_v16 = vld [vmem:[%s4429_s13 + $0x18] sm:$0xff]   ;;  %v3395_v26 = vld [vmem:[%s4429_s13 + $0x10] sm:$0xff]   ;;  %s4438_s16 = sld [smem:[#allocation41_spill]] }
  0xee   :  { %2971 = vmatmul.mubr.msk.bf16.vlgmr.msra.gmra.mxu1 %vm528_vm2, %v519_v7  ;;  %v3393_v14 = vld [vmem:[%s4429_s13 + $0x20] sm:$0xff]   ;;  %vm359_vm3 = vcmp.eq.s32.totalorder %v353_v8, %v2614_v12  ;;  %vm360_vm4 = vcmp.eq.s32.totalorder %v354_v10, %v2614_v12  ;;  %v3396_v33 = vld [vmem:[%s4429_s13 + $0x8] sm:$0xff]   ;;  %s4439_s18 = sld [smem:[#allocation42_spill]] }
  0xef   :  { %2975 = vmatpush3.bf16.msra.mxu1 %v3390_v9  ;;  %2990 = vmatprep.mubr.msk.bf16.mxu1 %vm3838_vm0, %v3837_v0  ;;  %vm4054_vm5 = vmpackc.low %vm360_vm4, %vm359_vm3  ;;  %v692_v18 = vld [vmem:[%s4431_s6] sm:$0x7]  ;;  %v312_v21 = vld [vmem:[%s4434_s22 + $0x8] sm:$0xff]  ;;  %s4440_s23 = sld [smem:[#allocation44_spill]] }
  0xf0   :  { %2953 = vmatpush3.bf16.msra.mxu0 %v3839_v1  ;;  %2976 = vmatprep.subr.bf16.mxu1 %v3837_v0  ;;  %v727_v19 = vsel %vm725_vm6, %v692_v18, 0  ;;  %v311_v20 = vld [vmem:[%s4434_s22] sm:$0xff]  ;;  %v313_v23 = vld [vmem:[%s4434_s22 + $0x10] sm:$0xff]  ;;  %v314_v24 = vld [vmem:[%s4434_s22 + $0x18] sm:$0xff]  ;;  %s4441_s21 = sld [smem:[#allocation43_spill]] }
  0xf1   :  { %2954 = vmatprep.subr.bf16.mxu0 %v3837_v0  ;;  %v4071_v22 = vpack.c.bf16 %v312_v21, %v311_v20  ;;  %v4075_v25 = vpack.c.bf16 %v314_v24, %v313_v23  ;;  %v315_v27 = vld [vmem:[%s4434_s22 + $0x20] sm:$0xff]  ;;  %v316_v28 = vld [vmem:[%s4434_s22 + $0x28] sm:$0xff]  ;;  %v317_v30 = vld [vmem:[%s4434_s22 + $0x30] sm:$0xff]  ;;  %s4442_s26 = sld [smem:[#allocation45_spill]] }
  0xf2   :  { %v4084_v29 = vpack.c.bf16 %v316_v28, %v315_v27  ;;  %v318_v31 = vld [vmem:[%s4434_s22 + $0x38] sm:$0xff]  ;;  %v3397_v34 = vld [vmem:[%s4429_s13] sm:$0xff]   ;;  %v320_v36 = vld [vmem:[%s4434_s22 + $0x48] sm:$0xff] }
  0xf3   :  { %2977 = vmatpush3.bf16.msra.mxu1 %v3391_v11  ;;  %v4089_v32 = vpack.c.bf16 %v318_v31, %v317_v30  ;;  %v319_v35 = vld [vmem:[%s4434_s22 + $0x40] sm:$0xff]  ;;  %v321_v38 = vld [vmem:[%s4434_s22 + $0x50] sm:$0xff]  ;;  %v322_v39 = vld [vmem:[%s4434_s22 + $0x58] sm:$0xff] }
  0xf4   :  { %2955 = vmatpush3.bf16.msra.mxu0 %v3839_v1  ;;  %2978 = vmatprep.subr.bf16.mxu1 %v3837_v0  ;;  %v4100_v37 = vpack.c.bf16 %v320_v36, %v319_v35  ;;  %v4104_v40 = vpack.c.bf16 %v322_v39, %v321_v38  ;;  %v323_v41 = vld [vmem:[%s4434_s22 + $0x60] sm:$0xff]  ;;  %v324_v42 = vld [vmem:[%s4434_s22 + $0x68] sm:$0xff]  ;;  %v325_v43 = vld [vmem:[%s4434_s22 + $0x70] sm:$0xff] }
  0xf5   :  { %2956 = vmatprep.subr.bf16.mxu0 %v3837_v0  ;;  %v4113_v44 = vpack.c.bf16 %v324_v42, %v323_v41  ;;  %v326_v45 = vld [vmem:[%s4434_s22 + $0x78] sm:$0xff]  ;;  %v336_v47 = vld [vmem:[%s4435_s9] sm:$0xff]  ;;  %v338_v48 = vld [vmem:[%s4435_s9 + $0x10] sm:$0xff] }
  0xf6   :  { %369 = vperm.xlu0 %3388, %v336_v47   ;;  %375 = vperm.xlu1 %3389, %v338_v48   ;;  %v337_v49 = vld [vmem:[%s4435_s9 + $0x8] sm:$0xff]  ;;  %v339_v50 = vld [vmem:[%s4435_s9 + $0x18] sm:$0xff]  ;;  %v4122_v51 = vpack.c.bf16 %v326_v45, %v325_v43  ;;  %v340_v52 = vld [vmem:[%s4435_s9 + $0x20] sm:$0xff] }
  0xf7   :  { %2979 = vmatpush3.bf16.msra.mxu1 %v3392_v13  ;;  %v341_v53 = vld [vmem:[%s4435_s9 + $0x28] sm:$0xff]  ;;  %v342_v54 = vld [vmem:[%s4435_s9 + $0x30] sm:$0xff]  ;;  %v343_v55 = vld [vmem:[%s4435_s9 + $0x38] sm:$0xff] }
  0xf8   :  { %2957 = vmatpush3.bf16.msra.mxu0 %v3839_v1  ;;  %2980 = vmatprep.subr.bf16.mxu1 %v3837_v0  ;;  %v344_v56 = vld [vmem:[%s4435_s9 + $0x40] sm:$0xff]  ;;  %v345_v57 = vld [vmem:[%s4435_s9 + $0x48] sm:$0xff]  ;;  %v346_v58 = vld [vmem:[%s4435_s9 + $0x50] sm:$0xff] }
  0xf9   :  { %2958 = vmatprep.subr.bf16.mxu0 %v3837_v0  ;;  %v347_v59 = vld [vmem:[%s4435_s9 + $0x58] sm:$0xff]  ;;  %v348_v60 = vld [vmem:[%s4435_s9 + $0x60] sm:$0xff]  ;;  %v349_v61 = vld [vmem:[%s4435_s9 + $0x68] sm:$0xff] }
  0xfa   :  { %372 = vperm.xlu0 %3388, %v337_v49   ;;  %378 = vperm.xlu1 %3389, %v339_v50   ;;  %v350_v62 = vld [vmem:[%s4435_s9 + $0x70] sm:$0xff]  ;;  %v351_v63 = vld [vmem:[%s4435_s9 + $0x78] sm:$0xff]  ;;  %v3404_v39 = vld [vmem:[%s4436_s25 + $0x8] sm:$0xff]  }
  0xfb   :  { %2981 = vmatpush3.bf16.msra.mxu1 %v3393_v14  ;;  %v3399_v13 = vld [vmem:[%s4436_s25 + $0x30] sm:$0xff]   ;;  %v3400_v14 = vld [vmem:[%s4436_s25 + $0x28] sm:$0xff]   ;;  %v3405_v49 = vld [vmem:[%s4436_s25] sm:$0xff]  }
  0xfc   :  { %2959 = vmatpush3.bf16.msra.mxu0 %v3839_v1  ;;  %2982 = vmatprep.subr.bf16.mxu1 %v3837_v0  ;;  %v3403_v23 = vld [vmem:[%s4436_s25 + $0x10] sm:$0xff]  }
  0xfd   :  { %2960 = vmatprep.subr.bf16.mxu0 %v3837_v0 }
  0xfe   :  { %381 = vperm.xlu0 %3388, %v340_v52   ;;  %384 = vperm.xlu1 %3389, %v341_v53   ;;  %v4153_v52 = vand.u32 127, %v352_v2 }
  0xff   :  { %2983 = vmatpush3.bf16.msra.mxu1 %v3394_v16  ;;  %v3401_v16 = vld [vmem:[%s4436_s25 + $0x20] sm:$0xff]  }
 0x100   :  { %2961 = vmatpush3.bf16.msra.mxu0 %v3839_v1  ;;  %2984 = vmatprep.subr.bf16.mxu1 %v3837_v0 }
 0x101   :  { %2962 = vmatprep.subr.bf16.mxu0 %v3837_v0 }
 0x102   :  { %387 = vperm.xlu0 %3388, %v342_v54   ;;  %390 = vperm.xlu1 %3389, %v343_v55  }
 0x103   :  { %2985 = vmatpush3.bf16.msra.mxu1 %v3395_v26 }
 0x104   :  { %2963 = vmatpush3.bf16.msra.mxu0 %v3839_v1  ;;  %2986 = vmatprep.subr.bf16.mxu1 %v3837_v0  ;;  %v3398_v1 = vld [vmem:[%s4436_s25 + $0x38] sm:$0xff]  }
 0x105   :  { %3334 = vmatprep.subr.msk.bf16.mxu0 %vm725_vm6, %v692_v18  ;;  %v3402_v18 = vld [vmem:[%s4436_s25 + $0x18] sm:$0xff]  }
 0x106   :  { %393 = vperm.xlu0 %3388, %v344_v56   ;;  %396 = vperm.xlu1 %3389, %v345_v57  }
 0x107   :  { %2965 = vmatmul.mubr.msk.bf16.vlgmr.msra.gmra.mxu0 %vm4054_vm5, %v3840_v17  ;;  %2987 = vmatpush3.bf16.msra.mxu1 %v3396_v33  ;;  %v4144_v33 = vld [vmem:[#allocation7] ss:$0 sm:$0xff] }
 0x108   :  { %2995 = vmatpush3.bf16.msra.mxu0 %v727_v19  ;;  %2996 = vmatprep.mubr.msk.bf16.mxu0 %vm700_vm7, %v4071_v22 }
 0x109   :  { %2988 = vmatprep.subr.bf16.mxu1 %v3837_v0 }
 0x10a   :  { %399 = vperm.xlu0 %3388, %v346_v58   ;;  %402 = vperm.xlu1 %3389, %v347_v59  }
 0x10b   :  { %2989 = vmatpush3.bf16.msra.mxu1 %v3397_v34 }
 0x10c   :  { %3012 = vmatprep.subr.bf16.mxu1 %v3398_v1 }
 0x10e   :  { %405 = vperm.xlu0 %3388, %v348_v60   ;;  %408 = vperm.xlu1 %3389, %v349_v61  }
 0x10f   :  { %2997 = vmatmul.mubr.msk.bf16.vlgmr.msra.gmra.mxu0 %vm700_vm7, %v4075_v25 }
 0x110   :  { %3000 = vmatprep.mubr.msk.bf16.mxu0 %vm700_vm7, %v4084_v29 }
 0x112   :  { %411 = vperm.xlu0 %3388, %v350_v62   ;;  %414 = vperm.xlu1 %3389, %v351_v63  }
 0x117   :  { %3001 = vmatmul.mubr.msk.bf16.gmra.mxu0 %vm700_vm7, %v4089_v32 }
 0x118   :  { %3004 = vmatprep.mubr.msk.bf16.mxu0 %vm700_vm7, %v4100_v37 }
 0x11f   :  { %3005 = vmatmul.mubr.msk.bf16.gmra.mxu0 %vm700_vm7, %v4104_v40 }
 0x120   :  { %3008 = vmatprep.mubr.msk.bf16.mxu0 %vm700_vm7, %v4113_v44 }
 0x127   :  { %3009 = vmatmul.mubr.msk.bf16.gmra.mxu0 %vm700_vm7, %v4122_v51 }
 0x171   :  { %v370_v42 = vpop.permute.xlu0 %369 }
 0x172   :  { %vm416_vm8 = vcmp.eq.s32.totalorder %v4153_v52, %v370_v42 }
 0x175   :  { %v373_v58 = vpop.permute.xlu0 %372 }
 0x176   :  { %vm417_vm9 = vcmp.eq.s32.totalorder %v4153_v52, %v373_v58 }
 0x1ae   :  { %v570_v4 = vpop.f32.mrf.mxu1 }
 0x1af   :  { %v571_v6 = vadd.f32 %v2635_v3, %v570_v4 }
 0x1b0   :  { %v2972_v5 = vpop.f32.mrf.mxu1 }
 0x1b1   :  { %v577_v10 = vmax.f32 %v571_v6, 0.0 }
 0x1b2   :  { %v573_v7 = vpop.f32.mrf.mxu1 }
 0x1b3   :  { %v574_v8 = vadd.f32 %v2635_v3, %v573_v7  ;;  %v2618_v3 = vsel %vm417_vm9, 1.0, %v3837_v0 }
 0x1b4   :  { %v2973_v9 = vpop.f32.mrf.mxu1 }
 0x1b5   :  { %v578_v11 = vmax.f32 %v574_v8, 0.0 }
 0x1b7   :  { %v579_v12 = vpack.c.bf16 %v578_v11, %v577_v10 }
 0x1b9   :  { %2991 = vmatmul.mubr.bf16.vlgmr.msra.gmra.mxu1 %v579_v12 }
 0x1ba   :  { %3013 = vmatpush3.bf16.msra.mxu1 %v3398_v1  ;;  %v2617_v1 = vsel %vm416_vm8, 1.0, %v3837_v0 }
 0x1bb   :  { %3014 = vmatprep.subr.bf16.mxu1 %v3399_v13  ;;  %v4163_v10 = vpack.c.bf16 %v2618_v3, %v2617_v1 }
 0x1bd   :  { %3046 = vmatprep.mubr.msk.bf16.mxu0 %vm1019_vm10, %v4163_v10 }
 0x1be   :  { %3015 = vmatpush3.bf16.msra.mxu1 %v3399_v13 }
 0x1bf   :  { %3016 = vmatprep.subr.bf16.mxu1 %v3400_v14 }
 0x1c2   :  { %3017 = vmatpush3.bf16.msra.mxu1 %v3400_v14 }
 0x1c3   :  { %3018 = vmatprep.subr.bf16.mxu1 %v3401_v16 }
 0x1c6   :  { %3019 = vmatpush3.bf16.msra.mxu1 %v3401_v16 }
 0x1c7   :  { %v506_v19 = vpop.f32.mrf.mxu0  ;;  %3020 = vmatprep.subr.bf16.mxu1 %v3402_v18 }
 0x1c8   :  { %v513_v20 = vmax.f32 %v506_v19, 1.0 }
 0x1c9   :  { %v2966_v21 = vpop.f32.mrf.mxu0 }
 0x1ca   :  { %3470 = vrcp.f32 %v513_v20  ;;  %3021 = vmatpush3.bf16.msra.mxu1 %v3402_v18 }
 0x1cb   :  { %v509_v24 = vpop.f32.mrf.mxu0  ;;  %3022 = vmatprep.subr.bf16.mxu1 %v3403_v23 }
 0x1cc   :  { %v514_v26 = vmax.f32 %v509_v24, 1.0 }
 0x1cd   :  { %v2967_v27 = vpop.f32.mrf.mxu0 }
 0x1ce   :  { %3472 = vrcp.f32 %v514_v26  ;;  %3023 = vmatpush3.bf16.msra.mxu1 %v3403_v23 }
 0x1cf   :  { %v2998_v31 = vpop.f32.mrf.mxu0  ;;  %3024 = vmatprep.subr.bf16.mxu1 %v3404_v39 }
 0x1d0   :  { %v772_v36 = vadd.f32 %v2998_v31, %v4144_v33 }
 0x1d1   :  { %v763_v34 = vpop.f32.mrf.mxu0 }
 0x1d2   :  { %v764_v35 = vadd.f32 %v4144_v33, %v763_v34  ;;  %3025 = vmatpush3.bf16.msra.mxu1 %v3404_v39  ;;  %v828_v46 = vmax.f32 %v772_v36, 0.0 }
 0x1d3   :  { %v2999_v38 = vpop.f32.mrf.mxu0  ;;  %3026 = vmatprep.subr.bf16.mxu1 %v3405_v49 }
 0x1d4   :  { %v826_v43 = vmax.f32 %v764_v35, 0.0  ;;  %v775_v47 = vadd.f32 %v2999_v38, %v4144_v33 }
 0x1d5   :  { %v766_v41 = vpop.f32.mrf.mxu0 }
 0x1d6   :  { %v767_v45 = vadd.f32 %v4144_v33, %v766_v41  ;;  %v829_v53 = vmax.f32 %v775_v47, 0.0  ;;  %3027 = vmatpush3.bf16.msra.mxu1 %v3405_v49  ;;  %v3407_v49 = vld [vmem:[%s4437_s14 + $0x30] sm:$0xff]  }
 0x1d7   :  { %v3471_v28 = vpop.eup %3470  ;;  %v3002_v48 = vpop.f32.mrf.mxu0 }
 0x1d8   :  { %1368 = vperm.xlu0 %3388, %v3471_v28   ;;  %v827_v50 = vmax.f32 %v767_v45, 0.0  ;;  %v843_v56 = vpack.c.bf16 %v829_v53, %v828_v46  ;;  %v788_v61 = vadd.f32 %v3002_v48, %v4144_v33  ;;  %v3406_v48 = vld [vmem:[%s4437_s14 + $0x38] sm:$0xff]   ;;  %v3409_v53 = vld [vmem:[%s4437_s14 + $0x20] sm:$0xff]  }
 0x1d9   :  { %v779_v54 = vpop.f32.mrf.mxu0  ;;  %3062 = vmatprep.subr.bf16.mxu1 %v3406_v48 }
 0x1da   :  { %v842_v55 = vpack.c.bf16 %v827_v50, %v826_v43  ;;  %v780_v60 = vadd.f32 %v4144_v33, %v779_v54  ;;  %v832_v6 = vmax.f32 %v788_v61, 0.0  ;;  %v3408_v50 = vld [vmem:[%s4437_s14 + $0x28] sm:$0xff]   ;;  %v376_v54 = vpop.permute.xlu1 %375 }
 0x1db   :  { %v3473_v30 = vpop.eup %3472  ;;  %v3003_v57 = vpop.f32.mrf.mxu0  ;;  %vm418_vm11 = vcmp.eq.s32.totalorder %v4153_v52, %v376_v54 }
 0x1dc   :  { %1373 = vperm.xlu1 %3389, %v3473_v30   ;;  %3028 = vmatprep.mubr.bf16.mxu1 %v842_v55  ;;  %v791_v62 = vadd.f32 %v3003_v57, %v4144_v33  ;;  %v830_v4 = vmax.f32 %v780_v60, 0.0 }
 0x1dd   :  { %v782_v59 = vpop.f32.mrf.mxu0  ;;  %3029 = vmatmul.mubr.bf16.vlgmr.msra.gmra.mxu1 %v843_v56  ;;  %v382_v56 = vpop.permute.xlu0 %381 }
 0x1de   :  { %v783_v2 = vadd.f32 %v4144_v33, %v782_v59  ;;  %v833_v7 = vmax.f32 %v791_v62, 0.0  ;;  %3063 = vmatpush3.bf16.msra.mxu1 %v3406_v48  ;;  %v379_v55 = vpop.permute.xlu1 %378  ;;  %v2637_v59 = vld [vmem:[#allocation6] ss:$0 sm:$0xff]  ;;  %vm420_vm13 = vcmp.eq.s32.totalorder %v4153_v52, %v382_v56 }
 0x1df   :  { %v3006_v63 = vpop.f32.mrf.mxu0  ;;  %3064 = vmatprep.subr.bf16.mxu1 %v3407_v49  ;;  %vm419_vm12 = vcmp.eq.s32.totalorder %v4153_v52, %v379_v55 }
 0x1e0   :  { %v831_v5 = vmax.f32 %v783_v2, 0.0  ;;  %v845_v11 = vpack.c.bf16 %v833_v7, %v832_v6  ;;  %v804_v16 = vadd.f32 %v3006_v63, %v4144_v33  ;;  %v2620_v6 = vsel %vm419_vm12, 1.0, %v3837_v0 }
 0x1e1   :  { %v795_v8 = vpop.f32.mrf.mxu0  ;;  %v388_v2 = vpop.permute.xlu0 %387  ;;  %v2621_v7 = vsel %vm420_vm13, 1.0, %v3837_v0 }
 0x1e2   :  { %v844_v9 = vpack.c.bf16 %v831_v5, %v830_v4  ;;  %v796_v14 = vadd.f32 %v4144_v33, %v795_v8  ;;  %v836_v23 = vmax.f32 %v804_v16, 0.0  ;;  %3065 = vmatpush3.bf16.msra.mxu1 %v3407_v49  ;;  %v385_v57 = vpop.permute.xlu1 %384  ;;  %v2619_v5 = vsel %vm418_vm11, 1.0, %v3837_v0 }
 0x1e3   :  { %v3007_v12 = vpop.f32.mrf.mxu0  ;;  %3066 = vmatprep.subr.bf16.mxu1 %v3408_v50  ;;  %vm421_vm14 = vcmp.eq.s32.totalorder %v4153_v52, %v385_v57  ;;  %vm422_vm15 = vcmp.eq.s32.totalorder %v4153_v52, %v388_v2 }
 0x1e4   :  { %3032 = vmatprep.mubr.bf16.mxu1 %v844_v9  ;;  %v807_v18 = vadd.f32 %v3007_v12, %v4144_v33  ;;  %v834_v20 = vmax.f32 %v796_v14, 0.0  ;;  %v2622_v8 = vsel %vm421_vm14, 1.0, %v3837_v0  ;;  %v4188_v12 = vpack.c.bf16 %v2620_v6, %v2619_v5 }
 0x1e5   :  { %v798_v13 = vpop.f32.mrf.mxu0  ;;  %3033 = vmatmul.mubr.bf16.gmra.mxu1 %v845_v11  ;;  %v394_v9 = vpop.permute.xlu0 %393 }
 0x1e6   :  { %v799_v21 = vadd.f32 %v4144_v33, %v798_v13  ;;  %v837_v24 = vmax.f32 %v807_v18, 0.0  ;;  %3067 = vmatpush3.bf16.msra.mxu1 %v3408_v50  ;;  %v391_v61 = vpop.permute.xlu1 %390  ;;  %v4191_v13 = vpack.c.bf16 %v2622_v8, %v2621_v7  ;;  %vm424_vm2 = vcmp.eq.s32.totalorder %v4153_v52, %v394_v9 }
 0x1e7   :  { %v3010_v19 = vpop.f32.mrf.mxu0  ;;  %3068 = vmatprep.subr.bf16.mxu1 %v3409_v53  ;;  %vm423_vm1 = vcmp.eq.s32.totalorder %v4153_v52, %v391_v61  ;;  %v2623_v18 = vsel %vm422_vm15, 1.0, %v3837_v0 }
 0x1e8   :  { %v835_v27 = vmax.f32 %v799_v21, 0.0  ;;  %v847_v28 = vpack.c.bf16 %v837_v24, %v836_v23  ;;  %v820_v34 = vadd.f32 %v3010_v19, %v4144_v33  ;;  %v2624_v19 = vsel %vm423_vm1, 1.0, %v3837_v0 }
 0x1e9   :  { %v811_v26 = vpop.f32.mrf.mxu0  ;;  %v400_v14 = vpop.permute.xlu0 %399  ;;  %v4205_v23 = vpack.c.bf16 %v2624_v19, %v2623_v18 }
 0x1ea   :  { %v846_v31 = vpack.c.bf16 %v835_v27, %v834_v20  ;;  %v812_v36 = vadd.f32 %v4144_v33, %v811_v26  ;;  %v840_v39 = vmax.f32 %v820_v34, 0.0  ;;  %3069 = vmatpush3.bf16.msra.mxu1 %v3409_v53  ;;  %v397_v11 = vpop.permute.xlu1 %396  ;;  %v2625_v20 = vsel %vm424_vm2, 1.0, %v3837_v0 }
 0x1eb   :  { %v3011_v30 = vpop.f32.mrf.mxu0  ;;  %vm425_vm3 = vcmp.eq.s32.totalorder %v4153_v52, %v397_v11  ;;  %vm426_vm4 = vcmp.eq.s32.totalorder %v4153_v52, %v400_v14 }
 0x1ec   :  { %3036 = vmatprep.mubr.bf16.mxu1 %v846_v31  ;;  %v823_v41 = vadd.f32 %v3011_v30, %v4144_v33  ;;  %v838_v42 = vmax.f32 %v812_v36, 0.0  ;;  %v2626_v21 = vsel %vm425_vm3, 1.0, %v3837_v0 }
 0x1ed   :  { %v814_v35 = vpop.f32.mrf.mxu0  ;;  %3037 = vmatmul.mubr.bf16.gmra.mxu1 %v847_v28  ;;  %v4207_v24 = vpack.c.bf16 %v2626_v21, %v2625_v20  ;;  %v406_v26 = vpop.permute.xlu0 %405  ;;  %v2627_v28 = vsel %vm426_vm4, 1.0, %v3837_v0 }
 0x1ee   :  { %v815_v38 = vadd.f32 %v4144_v33, %v814_v35  ;;  %v841_v45 = vmax.f32 %v823_v41, 0.0  ;;  %v3410_v33 = vld [vmem:[%s4437_s14 + $0x18] sm:$0xff]   ;;  %v403_v16 = vpop.permute.xlu1 %402  ;;  %vm428_vm9 = vcmp.eq.s32.totalorder %v4153_v52, %v406_v26 }
 0x1ef   :  { %3070 = vmatprep.subr.bf16.mxu1 %v3410_v33  ;;  %vm427_vm8 = vcmp.eq.s32.totalorder %v4153_v52, %v403_v16  ;;  %v2629_v31 = vsel %vm428_vm9, 1.0, %v3837_v0 }
 0x1f0   :  { %v839_v43 = vmax.f32 %v815_v38, 0.0  ;;  %v849_v47 = vpack.c.bf16 %v841_v45, %v840_v39  ;;  %3071 = vmatpush3.bf16.msra.mxu1 %v3410_v33  ;;  %v2628_v30 = vsel %vm427_vm8, 1.0, %v3837_v0  ;;  %v3411_v45 = vld [vmem:[%s4437_s14 + $0x10] sm:$0xff]  }
 0x1f1   :  { %v4221_v35 = vpack.c.bf16 %v2628_v30, %v2627_v28  ;;  %v412_v38 = vpop.permute.xlu0 %411  ;;  %3072 = vmatprep.subr.bf16.mxu1 %v3411_v45 }
 0x1f2   :  { %v848_v46 = vpack.c.bf16 %v839_v43, %v838_v42  ;;  %v409_v27 = vpop.permute.xlu1 %408  ;;  %vm430_vm12 = vcmp.eq.s32.totalorder %v4153_v52, %v412_v38 }
 0x1f3   :  { %vm429_vm11 = vcmp.eq.s32.totalorder %v4153_v52, %v409_v27  ;;  %v2631_v41 = vsel %vm430_vm12, 1.0, %v3837_v0 }
 0x1f4   :  { %3040 = vmatprep.mubr.bf16.mxu1 %v848_v46  ;;  %v2630_v34 = vsel %vm429_vm11, 1.0, %v3837_v0  ;;  %3073 = vmatpush3.bf16.msra.mxu1 %v3411_v45  ;;  %v3413_v46 = vld [vmem:[%s4437_s14] sm:$0xff]  }
 0x1f5   :  { %3041 = vmatmul.mubr.bf16.gmra.mxu1 %v849_v47  ;;  %v4223_v36 = vpack.c.bf16 %v2630_v34, %v2629_v31 }
 0x1f6   :  { %v415_v39 = vpop.permute.xlu1 %414 }
 0x1f7   :  { %vm431_vm13 = vcmp.eq.s32.totalorder %v4153_v52, %v415_v39  ;;  %v3412_v52 = vld [vmem:[%s4437_s14 + $0x8] sm:$0xff]  }
 0x1f8   :  { %v2632_v42 = vsel %vm431_vm13, 1.0, %v3837_v0  ;;  %3074 = vmatprep.subr.bf16.mxu1 %v3412_v52 }
 0x1f9   :  { %v4233_v43 = vpack.c.bf16 %v2632_v42, %v2631_v41  ;;  %3075 = vmatpush3.bf16.msra.mxu1 %v3412_v52 }
 0x1fa   :  { %3076 = vmatprep.subr.bf16.mxu1 %v3413_v46 }
 0x1fd   :  { %3077 = vmatpush3.bf16.msra.mxu1 %v3413_v46 }
 0x1fe   :  { %3114 = vmatprep.subr.bf16.mxu1 %v3837_v0 }
 0x279   :  { %v685_v58 = vpop.f32.mrf.mxu1 }
 0x27a   :  { %v686_v63 = vadd.f32 %v2637_v59, %v685_v58  ;;  %v2655_v58 = vld [vmem:[#allocation9] ss:$0 sm:$0xff] }
 0x27b   :  { %v2992_v60 = vpop.f32.mrf.mxu1 }
 0x27d   :  { %v688_v62 = vpop.f32.mrf.mxu1 }
 0x27e   :  { %v689_v1 = vadd.f32 %v2637_v59, %v688_v62 }
 0x27f   :  { %v2993_v3 = vpop.f32.mrf.mxu1 }
 0x280   :  { %v1018_v4 = vpack.c.bf16 %v689_v1, %v686_v63 }
 0x282   :  { %3044 = vmatprep.subr.bf16.mxu0 %v1018_v4 }
 0x283   :  { %3045 = vmatpush3.bf16.msra.mxu0 %v1018_v4 }
 0x284   :  { %3094 = vmatprep.subr.bf16.mxu0 %v3837_v0 }
 0x286   :  { %3047 = vmatmul.mubr.msk.bf16.vlgmr.msra.gmra.mxu0 %vm1019_vm10, %v4188_v12 }
 0x287   :  { %3050 = vmatprep.mubr.msk.bf16.mxu0 %vm1019_vm10, %v4191_v13 }
 0x28e   :  { %3051 = vmatmul.mubr.msk.bf16.gmra.mxu0 %vm1019_vm10, %v4205_v23 }
 0x28f   :  { %3054 = vmatprep.mubr.msk.bf16.mxu0 %vm1019_vm10, %v4207_v24 }
 0x296   :  { %3055 = vmatmul.mubr.msk.bf16.gmra.mxu0 %vm1019_vm10, %v4221_v35 }
 0x297   :  { %3058 = vmatprep.mubr.msk.bf16.mxu0 %vm1019_vm10, %v4223_v36 }
 0x29d   :  { %v3030_v47 = vpop.f32.mrf.mxu1 }
 0x29e   :  { %3059 = vmatmul.mubr.msk.bf16.gmra.mxu0 %vm1019_vm10, %v4233_v43  ;;  %v964_v1 = vadd.f32 %v3030_v47, %v2655_v58 }
 0x29f   :  { %3110 = vmatprep.mubr.msk.bf16.mxu0 %vm3838_vm0, %v3837_v0  ;;  %v955_v48 = vpop.f32.mrf.mxu1 }
 0x2a0   :  { %v956_v62 = vadd.f32 %v2655_v58, %v955_v48 }
 0x2a1   :  { %v3031_v49 = vpop.f32.mrf.mxu1 }
 0x2a2   :  { %v967_v2 = vadd.f32 %v3031_v49, %v2655_v58 }
 0x2a3   :  { %v958_v50 = vpop.f32.mrf.mxu1 }
 0x2a4   :  { %v959_v63 = vadd.f32 %v2655_v58, %v958_v50 }
 0x2a5   :  { %v3034_v53 = vpop.f32.mrf.mxu1 }
 0x2a6   :  { %v980_v27 = vadd.f32 %v3034_v53, %v2655_v58 }
 0x2a7   :  { %v971_v33 = vpop.f32.mrf.mxu1 }
 0x2a8   :  { %v972_v21 = vadd.f32 %v2655_v58, %v971_v33 }
 0x2a9   :  { %v3035_v54 = vpop.f32.mrf.mxu1 }
 0x2aa   :  { %v983_v19 = vadd.f32 %v3035_v54, %v2655_v58 }
 0x2ab   :  { %v974_v55 = vpop.f32.mrf.mxu1 }
 0x2ac   :  { %v975_v26 = vadd.f32 %v2655_v58, %v974_v55 }
 0x2ad   :  { %v3038_v56 = vpop.f32.mrf.mxu1 }
 0x2ae   :  { %v996_v33 = vadd.f32 %v3038_v56, %v2655_v58 }
 0x2af   :  { %v987_v60 = vpop.f32.mrf.mxu1 }
 0x2b0   :  { %v988_v49 = vadd.f32 %v2655_v58, %v987_v60 }
 0x2b1   :  { %v3039_v5 = vpop.f32.mrf.mxu1 }
 0x2b2   :  { %v999_v47 = vadd.f32 %v3039_v5, %v2655_v58 }
 0x2b3   :  { %v990_v18 = vpop.f32.mrf.mxu1 }
 0x2b4   :  { %v991_v50 = vadd.f32 %v2655_v58, %v990_v18 }
 0x2b5   :  { %v3042_v31 = vpop.f32.mrf.mxu1 }
 0x2b6   :  { %v1012_v56 = vadd.f32 %v3042_v31, %v2655_v58 }
 0x2b7   :  { %v1003_v46 = vpop.f32.mrf.mxu1 }
 0x2b8   :  { %v1004_v60 = vadd.f32 %v2655_v58, %v1003_v46 }
 0x2b9   :  { %v3043_v55 = vpop.f32.mrf.mxu1 }
 0x346   :  { %v3048_v57 = vpop.f32.mrf.mxu0 }
 0x347   :  { %v1087_v8 = vadd.f32 %v3048_v57, %v964_v1 }
 0x348   :  { %v1078_v59 = vpop.f32.mrf.mxu0 }
 0x349   :  { %v1079_v6 = vadd.f32 %v1078_v59, %v956_v62 }
 0x34a   :  { %v3049_v61 = vpop.f32.mrf.mxu0 }
 0x34b   :  { %v1090_v3 = vadd.f32 %v3049_v61, %v967_v2 }
 0x34c   :  { %v1081_v4 = vpop.f32.mrf.mxu0 }
 0x34d   :  { %v1082_v7 = vadd.f32 %v1081_v4, %v959_v63  ;;  %v1142_v14 = vpack.c.bf16 %v1090_v3, %v1087_v8  ;;  %v1006_v3 = vpop.f32.mrf.mxu1  ;;  %v1015_v4 = vadd.f32 %v3043_v55, %v2655_v58 }
 0x34e   :  { %v3052_v9 = vpop.f32.mrf.mxu0 }
 0x34f   :  { %v1141_v11 = vpack.c.bf16 %v1082_v7, %v1079_v6  ;;  %v1103_v39 = vadd.f32 %v3052_v9, %v980_v27  ;;  %v1007_v6 = vadd.f32 %v2655_v58, %v1006_v3  ;;  %v3416_v58 = vld [vmem:[%s4438_s16 + $0x28] sm:$0xff]   ;;  %v3419_v27 = vld [vmem:[%s4438_s16 + $0x10] sm:$0xff]  }
 0x350   :  { %v1094_v16 = vpop.f32.mrf.mxu0 }
 0x351   :  { %3078 = vmatprep.mubr.bf16.mxu1 %v1141_v11  ;;  %v1095_v34 = vadd.f32 %v1094_v16, %v972_v21  ;;  %v3417_v21 = vld [vmem:[%s4438_s16 + $0x20] sm:$0xff]  }
 0x352   :  { %v3053_v20 = vpop.f32.mrf.mxu0  ;;  %3079 = vmatmul.mubr.bf16.vlgmr.msra.gmra.mxu1 %v1142_v14 }
 0x353   :  { %v1106_v28 = vadd.f32 %v3053_v20, %v983_v19  ;;  %v3414_v19 = vld [vmem:[%s4438_s16 + $0x38] sm:$0xff]   ;;  %v3415_v20 = vld [vmem:[%s4438_s16 + $0x30] sm:$0xff]  }
 0x354   :  { %v1097_v30 = vpop.f32.mrf.mxu0  ;;  %3115 = vmatpush3.bf16.msra.mxu1 %v3414_v19 }
 0x355   :  { %v1098_v38 = vadd.f32 %v1097_v30, %v975_v26  ;;  %v1144_v45 = vpack.c.bf16 %v1106_v28, %v1103_v39  ;;  %3116 = vmatprep.subr.bf16.mxu1 %v3837_v0  ;;  %v3418_v26 = vld [vmem:[%s4438_s16 + $0x18] sm:$0xff]  }
 0x356   :  { %v3056_v41 = vpop.f32.mrf.mxu0 }
 0x357   :  { %v1143_v42 = vpack.c.bf16 %v1098_v38, %v1095_v34  ;;  %v1119_v2 = vadd.f32 %v3056_v41, %v996_v33 }
 0x358   :  { %v1110_v52 = vpop.f32.mrf.mxu0  ;;  %3117 = vmatpush3.bf16.msra.mxu1 %v3415_v20 }
 0x359   :  { %3082 = vmatprep.mubr.bf16.mxu1 %v1143_v42  ;;  %v1111_v57 = vadd.f32 %v1110_v52, %v988_v49  ;;  %3118 = vmatprep.subr.bf16.mxu1 %v3837_v0 }
 0x35a   :  { %v3057_v48 = vpop.f32.mrf.mxu0  ;;  %3083 = vmatmul.mubr.bf16.gmra.mxu1 %v1144_v45 }
 0x35b   :  { %v1122_v54 = vadd.f32 %v3057_v48, %v999_v47 }
 0x35c   :  { %v1113_v53 = vpop.f32.mrf.mxu0  ;;  %3119 = vmatpush3.bf16.msra.mxu1 %v3416_v58  ;;  %v3420_v58 = vld [vmem:[%s4438_s16 + $0x8] sm:$0xff]  }
 0x35d   :  { %v1114_v59 = vadd.f32 %v1113_v53, %v991_v50  ;;  %v1146_v63 = vpack.c.bf16 %v1122_v54, %v1119_v2  ;;  %3120 = vmatprep.subr.bf16.mxu1 %v3837_v0  ;;  %v2672_v50 = vld [vmem:[#allocation10] ss:$0 sm:$0xff] }
 0x35e   :  { %v3060_v61 = vpop.f32.mrf.mxu0 }
 0x35f   :  { %v1145_v62 = vpack.c.bf16 %v1114_v59, %v1111_v57  ;;  %v1135_v14 = vadd.f32 %v3060_v61, %v1012_v56 }
 0x360   :  { %v1126_v1 = vpop.f32.mrf.mxu0  ;;  %3121 = vmatpush3.bf16.msra.mxu1 %v3417_v21  ;;  %v3421_v21 = vld [vmem:[%s4438_s16] sm:$0xff]  }
 0x361   :  { %3086 = vmatprep.mubr.bf16.mxu1 %v1145_v62  ;;  %v1127_v9 = vadd.f32 %v1126_v1, %v1004_v60  ;;  %3122 = vmatprep.subr.bf16.mxu1 %v3837_v0 }
 0x362   :  { %v3061_v5 = vpop.f32.mrf.mxu0  ;;  %3087 = vmatmul.mubr.bf16.gmra.mxu1 %v1146_v63 }
 0x363   :  { %v1138_v7 = vadd.f32 %v3061_v5, %v1015_v4 }
 0x364   :  { %v1129_v8 = vpop.f32.mrf.mxu0  ;;  %3123 = vmatpush3.bf16.msra.mxu1 %v3418_v26  ;;  %v3422_v26 = vld [vmem:[%s4439_s18 + $0x38] sm:$0xff]  }
 0x365   :  { %v1130_v11 = vadd.f32 %v1129_v8, %v1007_v6  ;;  %v1148_v18 = vpack.c.bf16 %v1138_v7, %v1135_v14  ;;  %3124 = vmatprep.subr.bf16.mxu1 %v3837_v0 }
 0x367   :  { %v1147_v16 = vpack.c.bf16 %v1130_v11, %v1127_v9 }
 0x368   :  { %3125 = vmatpush3.bf16.msra.mxu1 %v3419_v27  ;;  %v3423_v27 = vld [vmem:[%s4439_s18 + $0x30] sm:$0xff]  }
 0x369   :  { %3090 = vmatprep.mubr.bf16.mxu1 %v1147_v16  ;;  %3126 = vmatprep.subr.bf16.mxu1 %v3837_v0 }
 0x36a   :  { %3091 = vmatmul.mubr.bf16.gmra.mxu1 %v1148_v18 }
 0x36b   :  { %3130 = vmatprep.mubr.msk.bf16.mxu1 %vm3838_vm0, %v3837_v0 }
 0x36c   :  { %3127 = vmatpush3.bf16.msra.mxu1 %v3420_v58 }
 0x36d   :  { %3128 = vmatprep.subr.bf16.mxu1 %v3837_v0 }
 0x370   :  { %3129 = vmatpush3.bf16.msra.mxu1 %v3421_v21  ;;  %v4333_v21 = vld [vmem:[#allocation15] ss:$0 sm:$0xff] }
 0x371   :  { %3154 = vmatprep.subr.bf16.mxu1 %v3837_v0 }
 0x412   :  { %v3080_v28 = vpop.f32.mrf.mxu1 }
 0x413   :  { %v1263_v14 = vadd.f32 %v3080_v28, %v2672_v50  ;;  %v3424_v28 = vld [vmem:[%s4439_s18 + $0x28] sm:$0xff]  }
 0x414   :  { %v1254_v30 = vpop.f32.mrf.mxu1 }
 0x415   :  { %v1255_v19 = vadd.f32 %v2672_v50, %v1254_v30  ;;  %v3425_v30 = vld [vmem:[%s4439_s18 + $0x20] sm:$0xff]  }
 0x416   :  { %v3081_v31 = vpop.f32.mrf.mxu1 }
 0x417   :  { %v1266_v9 = vadd.f32 %v3081_v31, %v2672_v50  ;;  %v3426_v31 = vld [vmem:[%s4439_s18 + $0x18] sm:$0xff]  }
 0x418   :  { %v1257_v34 = vpop.f32.mrf.mxu1 }
 0x419   :  { %v1318_v16 = vpack.c.bf16 %v1266_v9, %v1263_v14  ;;  %v1258_v18 = vadd.f32 %v2672_v50, %v1257_v34  ;;  %v3427_v34 = vld [vmem:[%s4439_s18 + $0x10] sm:$0xff]  }
 0x41a   :  { %v3084_v38 = vpop.f32.mrf.mxu1 }
 0x41b   :  { %v1279_v6 = vadd.f32 %v3084_v38, %v2672_v50  ;;  %v1317_v20 = vpack.c.bf16 %v1258_v18, %v1255_v19 }
 0x41c   :  { %v1270_v39 = vpop.f32.mrf.mxu1 }
 0x41d   :  { %v1271_v8 = vadd.f32 %v2672_v50, %v1270_v39 }
 0x41e   :  { %v3085_v41 = vpop.f32.mrf.mxu1 }
 0x41f   :  { %v1282_v5 = vadd.f32 %v3085_v41, %v2672_v50  ;;  %v4286_v41 = vpop.permute.xlu0 %1368 }
 0x420   :  { %v1273_v42 = vpop.f32.mrf.mxu1 }
 0x421   :  { %v1320_v56 = vpack.c.bf16 %v1282_v5, %v1279_v6  ;;  %v1274_v7 = vadd.f32 %v2672_v50, %v1273_v42  ;;  %v4288_v42 = vpop.permute.xlu1 %1373  ;;  %v1719_v5 = vld [vmem:[#allocation13] sm:$0x7] }
 0x422   :  { %v3088_v45 = vpop.f32.mrf.mxu1  ;;  %v3435_v6 = vld [vmem:[%s4440_s23 + $0x10] sm:$0xff]  }
 0x423   :  { %v1295_v63 = vadd.f32 %v3088_v45, %v2672_v50  ;;  %v1319_v11 = vpack.c.bf16 %v1274_v7, %v1271_v8  ;;  %v3442_v7 = vld [vmem:[#allocation16 + $0x18] sm:$0xff]  }
 0x424   :  { %v1286_v52 = vpop.f32.mrf.mxu1 }
 0x425   :  { %v1287_v4 = vadd.f32 %v2672_v50, %v1286_v52 }
 0x426   :  { %v3089_v46 = vpop.f32.mrf.mxu1 }
 0x427   :  { %v1298_v61 = vadd.f32 %v3089_v46, %v2672_v50 }
 0x428   :  { %v1289_v47 = vpop.f32.mrf.mxu1 }
 0x429   :  { %v1322_v1 = vpack.c.bf16 %v1298_v61, %v1295_v63  ;;  %v1290_v3 = vadd.f32 %v2672_v50, %v1289_v47 }
 0x42a   :  { %v3092_v48 = vpop.f32.mrf.mxu1 }
 0x42b   :  { %v1311_v54 = vadd.f32 %v3092_v48, %v2672_v50  ;;  %v1321_v60 = vpack.c.bf16 %v1290_v3, %v1287_v4 }
 0x42c   :  { %v1302_v49 = vpop.f32.mrf.mxu1 }
 0x42d   :  { %v1303_v2 = vadd.f32 %v2672_v50, %v1302_v49  ;;  %v3428_v49 = vld [vmem:[%s4439_s18 + $0x8] sm:$0xff]  }
 0x42e   :  { %v3093_v33 = vpop.f32.mrf.mxu1 }
 0x42f   :  { %v1314_v53 = vadd.f32 %v3093_v33, %v2672_v50  ;;  %v3430_v33 = vld [vmem:[%s4440_s23 + $0x38] sm:$0xff]  }
 0x430   :  { %v1305_v55 = vpop.f32.mrf.mxu1 }
 0x431   :  { %v1324_v57 = vpack.c.bf16 %v1314_v53, %v1311_v54  ;;  %v1306_v59 = vadd.f32 %v2672_v50, %v1305_v55  ;;  %v3429_v50 = vld [vmem:[%s4439_s18] sm:$0xff]   ;;  %v3431_v54 = vld [vmem:[%s4440_s23 + $0x30] sm:$0xff]   ;;  %v3432_v53 = vld [vmem:[%s4440_s23 + $0x28] sm:$0xff]  }
 0x432   :  { %v3433_v55 = vld [vmem:[%s4440_s23 + $0x20] sm:$0xff]  }
 0x433   :  { %3095 = vmatpush3.bf16.msra.mxu0 %v1324_v57  ;;  %v1323_v62 = vpack.c.bf16 %v1306_v59, %v1303_v2  ;;  %v3434_v57 = vld [vmem:[%s4440_s23 + $0x18] sm:$0xff]   ;;  %v2683_v2 = vld [vmem:[#allocation12] ss:$0 sm:$0xff] }
 0x434   :  { %3096 = vmatprep.subr.bf16.mxu0 %v3837_v0 }
 0x437   :  { %3097 = vmatpush3.bf16.msra.mxu0 %v1323_v62 }
 0x438   :  { %3098 = vmatprep.subr.bf16.mxu0 %v3837_v0 }
 0x43b   :  { %3099 = vmatpush3.bf16.msra.mxu0 %v1322_v1 }
 0x43c   :  { %3100 = vmatprep.subr.bf16.mxu0 %v3837_v0 }
 0x43f   :  { %3101 = vmatpush3.bf16.msra.mxu0 %v1321_v60  ;;  %v1728_v60 = vsel %vm725_vm6, %v1719_v5, 0 }
 0x440   :  { %3102 = vmatprep.subr.bf16.mxu0 %v3837_v0 }
 0x443   :  { %3103 = vmatpush3.bf16.msra.mxu0 %v1320_v56  ;;  %v3436_v56 = vld [vmem:[%s4440_s23 + $0x8] sm:$0xff]  }
 0x444   :  { %3104 = vmatprep.subr.bf16.mxu0 %v3837_v0 }
 0x447   :  { %3105 = vmatpush3.bf16.msra.mxu0 %v1319_v11 }
 0x448   :  { %3106 = vmatprep.subr.bf16.mxu0 %v3837_v0 }
 0x44b   :  { %3107 = vmatpush3.bf16.msra.mxu0 %v1318_v16 }
 0x44c   :  { %3108 = vmatprep.subr.bf16.mxu0 %v3837_v0 }
 0x44f   :  { %3109 = vmatpush3.bf16.msra.mxu0 %v1317_v20 }
 0x450   :  { %3134 = vmatprep.subr.bf16.mxu0 %v3837_v0 }
 0x452   :  { %3111 = vmatmul.mubr.msk.bf16.vlgmr.msra.gmra.mxu0 %vm4054_vm5, %v3840_v17 }
 0x453   :  { %3150 = vmatprep.mubr.msk.bf16.mxu0 %vm3838_vm0, %v3837_v0  ;;  %3135 = vmatpush3.bf16.msra.mxu0 %v3422_v26 }
 0x454   :  { %3136 = vmatprep.subr.bf16.mxu0 %v3837_v0 }
 0x457   :  { %3137 = vmatpush3.bf16.msra.mxu0 %v3423_v27 }
 0x458   :  { %3138 = vmatprep.subr.bf16.mxu0 %v3837_v0 }
 0x45b   :  { %3139 = vmatpush3.bf16.msra.mxu0 %v3424_v28 }
 0x45c   :  { %3140 = vmatprep.subr.bf16.mxu0 %v3837_v0 }
 0x45f   :  { %3141 = vmatpush3.bf16.msra.mxu0 %v3425_v30 }
 0x460   :  { %3142 = vmatprep.subr.bf16.mxu0 %v3837_v0 }
 0x463   :  { %3143 = vmatpush3.bf16.msra.mxu0 %v3426_v31  ;;  %v3444_v31 = vld [vmem:[#allocation16 + $0x8] sm:$0xff]  }
 0x464   :  { %3144 = vmatprep.subr.bf16.mxu0 %v3837_v0 }
 0x467   :  { %3145 = vmatpush3.bf16.msra.mxu0 %v3427_v34 }
 0x468   :  { %3146 = vmatprep.subr.bf16.mxu0 %v3837_v0 }
 0x46b   :  { %3147 = vmatpush3.bf16.msra.mxu0 %v3428_v49 }
 0x46c   :  { %3148 = vmatprep.subr.bf16.mxu0 %v3837_v0 }
 0x46f   :  { %3149 = vmatpush3.bf16.msra.mxu0 %v3429_v50 }
 0x470   :  { %3335 = vmatprep.subr.msk.bf16.mxu0 %vm725_vm6, %v1719_v5 }
 0x512   :  { %v1359_v38 = vpop.f32.mrf.mxu0 }
 0x513   :  { %v1376_v52 = vmul.f32 %v4286_v41, %v1359_v38 }
 0x514   :  { %v3112_v39 = vpop.f32.mrf.mxu0 }
 0x516   :  { %v1362_v45 = vpop.f32.mrf.mxu0 }
 0x517   :  { %v1377_v46 = vmul.f32 %v4288_v42, %v1362_v45 }
 0x518   :  { %v3113_v47 = vpop.f32.mrf.mxu0 }
 0x519   :  { %v1378_v48 = vpack.c.bf16 %v1377_v46, %v1376_v52  ;;  %v3445_v46 = vld [vmem:[#allocation16] sm:$0xff]  }
 0x51b   :  { %3131 = vmatmul.mubr.bf16.vlgmr.msra.gmra.mxu1 %v1378_v48 }
 0x51c   :  { %3170 = vmatprep.mubr.msk.bf16.mxu1 %vm3838_vm0, %v3837_v0  ;;  %3155 = vmatpush3.bf16.msra.mxu1 %v3430_v33 }
 0x51d   :  { %3156 = vmatprep.subr.bf16.mxu1 %v3837_v0 }
 0x520   :  { %3157 = vmatpush3.bf16.msra.mxu1 %v3431_v54 }
 0x521   :  { %3158 = vmatprep.subr.bf16.mxu1 %v3837_v0 }
 0x524   :  { %3159 = vmatpush3.bf16.msra.mxu1 %v3432_v53 }
 0x525   :  { %3160 = vmatprep.subr.bf16.mxu1 %v3837_v0 }
 0x528   :  { %3161 = vmatpush3.bf16.msra.mxu1 %v3433_v55 }
 0x529   :  { %3162 = vmatprep.subr.bf16.mxu1 %v3837_v0 }
 0x52c   :  { %3163 = vmatpush3.bf16.msra.mxu1 %v3434_v57 }
 0x52d   :  { %3164 = vmatprep.subr.bf16.mxu1 %v3837_v0 }
 0x530   :  { %3165 = vmatpush3.bf16.msra.mxu1 %v3435_v6 }
 0x531   :  { %3166 = vmatprep.subr.bf16.mxu1 %v3837_v0 }
 0x534   :  { %3167 = vmatpush3.bf16.msra.mxu1 %v3436_v56 }
 0x535   :  { %3168 = vmatprep.subr.bf16.mxu1 %v3837_v0 }
 0x5db   :  { %v1484_v59 = vpop.f32.mrf.mxu1 }
 0x5dc   :  { %v1485_v63 = vadd.f32 %v2683_v2, %v1484_v59 }
 0x5dd   :  { %v3132_v61 = vpop.f32.mrf.mxu1 }
 0x5df   :  { %v1487_v62 = vpop.f32.mrf.mxu1 }
 0x5e0   :  { %v1488_v1 = vadd.f32 %v2683_v2, %v1487_v62 }
 0x5e1   :  { %v3133_v3 = vpop.f32.mrf.mxu1 }
 0x5e2   :  { %v1491_v4 = vpack.c.bf16 %v1488_v1, %v1485_v63 }
 0x5e4   :  { %3151 = vmatmul.mubr.bf16.vlgmr.msra.gmra.mxu0 %v1491_v4 }
 0x5e5   :  { %3176 = vmatprep.mubr.msk.bf16.mxu0 %vm700_vm7, %v4071_v22  ;;  %3175 = vmatpush3.bf16.msra.mxu0 %v1728_v60  ;;  %v3437_v22 = vld [vmem:[%s4440_s23] sm:$0xff]  }
 0x5e6   :  { %3169 = vmatpush3.bf16.msra.mxu1 %v3437_v22 }
 0x5ec   :  { %3177 = vmatmul.mubr.msk.bf16.vlgmr.msra.gmra.mxu0 %vm700_vm7, %v4075_v25  ;;  %v3438_v25 = vld [vmem:[#allocation16 + $0x38] sm:$0xff]  }
 0x5ed   :  { %3180 = vmatprep.mubr.msk.bf16.mxu0 %vm700_vm7, %v4084_v29  ;;  %v3439_v29 = vld [vmem:[#allocation16 + $0x30] sm:$0xff]   ;;  %3192 = vmatprep.subr.bf16.mxu0 %v3438_v25 }
 0x5ee   :  { %3193 = vmatpush3.bf16.msra.mxu0 %v3438_v25 }
 0x5ef   :  { %3194 = vmatprep.subr.bf16.mxu0 %v3439_v29 }
 0x5f2   :  { %3195 = vmatpush3.bf16.msra.mxu0 %v3439_v29 }
 0x5f4   :  { %3181 = vmatmul.mubr.msk.bf16.gmra.mxu0 %vm700_vm7, %v4089_v32  ;;  %v3440_v32 = vld [vmem:[#allocation16 + $0x28] sm:$0xff]  }
 0x5f5   :  { %3184 = vmatprep.mubr.msk.bf16.mxu0 %vm700_vm7, %v4100_v37  ;;  %3196 = vmatprep.subr.bf16.mxu0 %v3440_v32  ;;  %v3441_v37 = vld [vmem:[#allocation16 + $0x20] sm:$0xff]  }
 0x5f6   :  { %3197 = vmatpush3.bf16.msra.mxu0 %v3440_v32 }
 0x5f7   :  { %3198 = vmatprep.subr.bf16.mxu0 %v3441_v37 }
 0x5fa   :  { %3199 = vmatpush3.bf16.msra.mxu0 %v3441_v37 }
 0x5fb   :  { %3200 = vmatprep.subr.bf16.mxu0 %v3442_v7 }
 0x5fc   :  { %3185 = vmatmul.mubr.msk.bf16.gmra.mxu0 %vm700_vm7, %v4104_v40  ;;  %v3443_v40 = vld [vmem:[#allocation16 + $0x10] sm:$0xff]  }
 0x5fd   :  { %3188 = vmatprep.mubr.msk.bf16.mxu0 %vm700_vm7, %v4113_v44  ;;  %v2692_v44 = vld [vmem:[%s4441_s21] ss:$0 sm:$0xff] }
 0x5fe   :  { %3201 = vmatpush3.bf16.msra.mxu0 %v3442_v7 }
 0x5ff   :  { %3202 = vmatprep.subr.bf16.mxu0 %v3443_v40 }
 0x602   :  { %3203 = vmatpush3.bf16.msra.mxu0 %v3443_v40 }
 0x603   :  { %3204 = vmatprep.subr.bf16.mxu0 %v3444_v31 }
 0x604   :  { %3189 = vmatmul.mubr.msk.bf16.gmra.mxu0 %vm700_vm7, %v4122_v51 }
 0x606   :  { %3205 = vmatpush3.bf16.msra.mxu0 %v3444_v31 }
 0x607   :  { %3206 = vmatprep.subr.bf16.mxu0 %v3445_v46 }
 0x60a   :  { %3207 = vmatpush3.bf16.msra.mxu0 %v3445_v46 }
 0x60b   :  { %3274 = vmatprep.subr.bf16.mxu0 %v3837_v0 }
 0x6a4   :  { %v1597_v8 = vpop.f32.mrf.mxu0 }
 0x6a5   :  { %v1598_v11 = vadd.f32 %v2692_v44, %v1597_v8 }
 0x6a6   :  { %v3152_v9 = vpop.f32.mrf.mxu0 }
 0x6a7   :  { %v1604_v51 = vmax.f32 %v1598_v11, 0.0 }
 0x6a8   :  { %v1600_v14 = vpop.f32.mrf.mxu0 }
 0x6a9   :  { %v1601_v16 = vadd.f32 %v2692_v44, %v1600_v14 }
 0x6aa   :  { %v3153_v18 = vpop.f32.mrf.mxu0 }
 0x6ab   :  { %v1605_v19 = vmax.f32 %v1601_v16, 0.0 }
 0x6ac   :  { %v3178_v58 = vpop.f32.mrf.mxu0 }
 0x6ad   :  { %v1606_v20 = vpack.c.bf16 %v1605_v19, %v1604_v51  ;;  %v1773_v28 = vadd.f32 %v3178_v58, %v4333_v21 }
 0x6ae   :  { %v1764_v26 = vpop.f32.mrf.mxu0 }
 0x6af   :  { %3171 = vmatmul.mubr.bf16.vlgmr.msra.gmra.mxu1 %v1606_v20  ;;  %v1765_v27 = vadd.f32 %v4333_v21, %v1764_v26  ;;  %v1829_v45 = vmax.f32 %v1773_v28, 0.0 }
 0x6b0   :  { %3226 = vmatprep.mubr.msk.bf16.mxu1 %vm1019_vm10, %v4163_v10  ;;  %v3179_v30 = vpop.f32.mrf.mxu0 }
 0x6b1   :  { %v1827_v38 = vmax.f32 %v1765_v27, 0.0  ;;  %v1776_v52 = vadd.f32 %v3179_v30, %v4333_v21 }
 0x6b2   :  { %v1767_v34 = vpop.f32.mrf.mxu0 }
 0x6b3   :  { %v1768_v39 = vadd.f32 %v4333_v21, %v1767_v34  ;;  %v1830_v48 = vmax.f32 %v1776_v52, 0.0 }
 0x6b4   :  { %v3182_v10 = vpop.f32.mrf.mxu0 }
 0x6b5   :  { %v1828_v47 = vmax.f32 %v1768_v39, 0.0  ;;  %v1844_v33 = vpack.c.bf16 %v1830_v48, %v1829_v45  ;;  %v1789_v59 = vadd.f32 %v3182_v10, %v4333_v21  ;;  %v2701_v39 = vld [vmem:[%s4442_s26] ss:$0 sm:$0xff] }
 0x6b6   :  { %v1780_v49 = vpop.f32.mrf.mxu0 }
 0x6b7   :  { %v1843_v50 = vpack.c.bf16 %v1828_v47, %v1827_v38  ;;  %v1781_v55 = vadd.f32 %v4333_v21, %v1780_v49  ;;  %v1833_v1 = vmax.f32 %v1789_v59, 0.0  ;;  %v3446_v49 = vld [vmem:[#allocation19 + $0x38] sm:$0xff]  }
 0x6b8   :  { %v3183_v54 = vpop.f32.mrf.mxu0 }
 0x6b9   :  { %3208 = vmatprep.mubr.bf16.mxu0 %v1843_v50  ;;  %v1792_v2 = vadd.f32 %v3183_v54, %v4333_v21  ;;  %v1831_v62 = vmax.f32 %v1781_v55, 0.0  ;;  %v3448_v50 = vld [vmem:[#allocation19 + $0x28] sm:$0xff]   ;;  %v3450_v54 = vld [vmem:[#allocation19 + $0x18] sm:$0xff]  }
 0x6ba   :  { %v1783_v53 = vpop.f32.mrf.mxu0  ;;  %3209 = vmatmul.mubr.bf16.vlgmr.msra.gmra.mxu0 %v1844_v33  ;;  %v3449_v33 = vld [vmem:[#allocation19 + $0x20] sm:$0xff]  }
 0x6bb   :  { %v1784_v57 = vadd.f32 %v4333_v21, %v1783_v53  ;;  %v1834_v3 = vmax.f32 %v1792_v2, 0.0 }
 0x6bc   :  { %v3186_v61 = vpop.f32.mrf.mxu0 }
 0x6bd   :  { %v1832_v63 = vmax.f32 %v1784_v57, 0.0  ;;  %v1846_v60 = vpack.c.bf16 %v1834_v3, %v1833_v1  ;;  %v1805_v29 = vadd.f32 %v3186_v61, %v4333_v21 }
 0x6be   :  { %v1796_v4 = vpop.f32.mrf.mxu0 }
 0x6bf   :  { %v1845_v5 = vpack.c.bf16 %v1832_v63, %v1831_v62  ;;  %v1797_v22 = vadd.f32 %v4333_v21, %v1796_v4  ;;  %v1837_v44 = vmax.f32 %v1805_v29, 0.0  ;;  %v2719_v62 = vld [vmem:[#allocation18] ss:$0 sm:$0xff] }
 0x6c0   :  { %v3187_v6 = vpop.f32.mrf.mxu0 }
 0x6c1   :  { %3212 = vmatprep.mubr.bf16.mxu0 %v1845_v5  ;;  %v1808_v32 = vadd.f32 %v3187_v6, %v4333_v21  ;;  %v1835_v7 = vmax.f32 %v1797_v22, 0.0 }
 0x6c2   :  { %v1799_v56 = vpop.f32.mrf.mxu0  ;;  %3213 = vmatmul.mubr.bf16.gmra.mxu0 %v1846_v60 }
 0x6c3   :  { %v1800_v25 = vadd.f32 %v4333_v21, %v1799_v56  ;;  %v1838_v8 = vmax.f32 %v1808_v32, 0.0 }
 0x6c4   :  { %v3190_v37 = vpop.f32.mrf.mxu0 }
 0x6c5   :  { %v1836_v40 = vmax.f32 %v1800_v25, 0.0  ;;  %v1848_v14 = vpack.c.bf16 %v1838_v8, %v1837_v44  ;;  %v1821_v18 = vadd.f32 %v3190_v37, %v4333_v21 }
 0x6c6   :  { %v1812_v9 = vpop.f32.mrf.mxu0 }
 0x6c7   :  { %v1847_v11 = vpack.c.bf16 %v1836_v40, %v1835_v7  ;;  %v1813_v19 = vadd.f32 %v4333_v21, %v1812_v9  ;;  %v1841_v58 = vmax.f32 %v1821_v18, 0.0 }
 0x6c8   :  { %v3191_v16 = vpop.f32.mrf.mxu0 }
 0x6c9   :  { %3216 = vmatprep.mubr.bf16.mxu0 %v1847_v11  ;;  %v1824_v26 = vadd.f32 %v3191_v16, %v4333_v21  ;;  %v1839_v27 = vmax.f32 %v1813_v19, 0.0 }
 0x6ca   :  { %v1815_v51 = vpop.f32.mrf.mxu0  ;;  %3217 = vmatmul.mubr.bf16.gmra.mxu0 %v1848_v14 }
 0x6cb   :  { %v1816_v20 = vadd.f32 %v4333_v21, %v1815_v51  ;;  %v1842_v30 = vmax.f32 %v1824_v26, 0.0  ;;  %v3447_v21 = vld [vmem:[#allocation19 + $0x30] sm:$0xff]  }
 0x6cd   :  { %v1840_v28 = vmax.f32 %v1816_v20, 0.0  ;;  %v1850_v34 = vpack.c.bf16 %v1842_v30, %v1841_v58 }
 0x6cf   :  { %v1849_v31 = vpack.c.bf16 %v1840_v28, %v1839_v27 }
 0x6d1   :  { %3220 = vmatprep.mubr.bf16.mxu0 %v1849_v31 }
 0x6d2   :  { %3221 = vmatmul.mubr.bf16.gmra.mxu0 %v1850_v34 }
 0x6d3   :  { %3290 = vmatprep.mubr.msk.bf16.mxu0 %vm3838_vm0, %v3837_v0 }
 0x76f   :  { %v1712_v38 = vpop.f32.mrf.mxu1 }
 0x770   :  { %v1713_v10 = vadd.f32 %v2701_v39, %v1712_v38 }
 0x771   :  { %v3172_v45 = vpop.f32.mrf.mxu1 }
 0x773   :  { %v1715_v52 = vpop.f32.mrf.mxu1 }
 0x774   :  { %v1716_v46 = vadd.f32 %v2701_v39, %v1715_v52 }
 0x775   :  { %v3173_v47 = vpop.f32.mrf.mxu1 }
 0x776   :  { %v2019_v48 = vpack.c.bf16 %v1716_v46, %v1713_v10 }
 0x778   :  { %3224 = vmatprep.subr.bf16.mxu1 %v2019_v48 }
 0x779   :  { %3225 = vmatpush3.bf16.msra.mxu1 %v2019_v48 }
 0x77a   :  { %3242 = vmatprep.subr.bf16.mxu1 %v3446_v49 }
 0x77c   :  { %3227 = vmatmul.mubr.msk.bf16.vlgmr.msra.gmra.mxu1 %vm1019_vm10, %v4188_v12  ;;  %v3451_v12 = vld [vmem:[#allocation19 + $0x10] sm:$0xff]  }
 0x77d   :  { %3230 = vmatprep.mubr.msk.bf16.mxu1 %vm1019_vm10, %v4191_v13  ;;  %3243 = vmatpush3.bf16.msra.mxu1 %v3446_v49  ;;  %v3452_v13 = vld [vmem:[#allocation19 + $0x8] sm:$0xff]  }
 0x77e   :  { %3244 = vmatprep.subr.bf16.mxu1 %v3447_v21 }
 0x781   :  { %3245 = vmatpush3.bf16.msra.mxu1 %v3447_v21 }
 0x782   :  { %3246 = vmatprep.subr.bf16.mxu1 %v3448_v50 }
 0x784   :  { %3231 = vmatmul.mubr.msk.bf16.gmra.mxu1 %vm1019_vm10, %v4205_v23  ;;  %v3453_v23 = vld [vmem:[#allocation19] sm:$0xff]  }
 0x785   :  { %3234 = vmatprep.mubr.msk.bf16.mxu1 %vm1019_vm10, %v4207_v24  ;;  %3247 = vmatpush3.bf16.msra.mxu1 %v3448_v50  ;;  %v3210_v24 = vpop.f32.mrf.mxu0 }
 0x786   :  { %3248 = vmatprep.subr.bf16.mxu1 %v3449_v33  ;;  %v1965_v6 = vadd.f32 %v3210_v24, %v2719_v62 }
 0x789   :  { %3249 = vmatpush3.bf16.msra.mxu1 %v3449_v33 }
 0x78a   :  { %3250 = vmatprep.subr.bf16.mxu1 %v3450_v54 }
 0x78c   :  { %3235 = vmatmul.mubr.msk.bf16.gmra.mxu1 %vm1019_vm10, %v4221_v35  ;;  %v1956_v35 = vpop.f32.mrf.mxu0 }
 0x78d   :  { %3238 = vmatprep.mubr.msk.bf16.mxu1 %vm1019_vm10, %v4223_v36  ;;  %3251 = vmatpush3.bf16.msra.mxu1 %v3450_v54  ;;  %v1957_v5 = vadd.f32 %v2719_v62, %v1956_v35 }
 0x78e   :  { %3252 = vmatprep.subr.bf16.mxu1 %v3451_v12  ;;  %v3211_v53 = vpop.f32.mrf.mxu0 }
 0x78f   :  { %v1968_v3 = vadd.f32 %v3211_v53, %v2719_v62 }
 0x790   :  { %v1959_v55 = vpop.f32.mrf.mxu0 }
 0x791   :  { %3253 = vmatpush3.bf16.msra.mxu1 %v3451_v12  ;;  %v1960_v60 = vadd.f32 %v2719_v62, %v1959_v55 }
 0x792   :  { %3254 = vmatprep.subr.bf16.mxu1 %v3452_v13  ;;  %v3214_v36 = vpop.f32.mrf.mxu0 }
 0x793   :  { %v1981_v51 = vadd.f32 %v3214_v36, %v2719_v62 }
 0x794   :  { %3239 = vmatmul.mubr.msk.bf16.gmra.mxu1 %vm1019_vm10, %v4233_v43  ;;  %v1972_v57 = vpop.f32.mrf.mxu0 }
 0x795   :  { %3255 = vmatpush3.bf16.msra.mxu1 %v3452_v13  ;;  %v1973_v16 = vadd.f32 %v2719_v62, %v1972_v57 }
 0x796   :  { %3256 = vmatprep.subr.bf16.mxu1 %v3453_v23  ;;  %v3215_v59 = vpop.f32.mrf.mxu0 }
 0x797   :  { %v1984_v11 = vadd.f32 %v3215_v59, %v2719_v62 }
 0x798   :  { %v1975_v2 = vpop.f32.mrf.mxu0 }
 0x799   :  { %3257 = vmatpush3.bf16.msra.mxu1 %v3453_v23  ;;  %v1976_v18 = vadd.f32 %v2719_v62, %v1975_v2 }
 0x79a   :  { %3294 = vmatprep.subr.bf16.mxu1 %v3837_v0  ;;  %v3218_v43 = vpop.f32.mrf.mxu0 }
 0x79b   :  { %v1997_v47 = vadd.f32 %v3218_v43, %v2719_v62 }
 0x79c   :  { %v1988_v1 = vpop.f32.mrf.mxu0 }
 0x79d   :  { %v1989_v10 = vadd.f32 %v2719_v62, %v1988_v1 }
 0x79e   :  { %v3219_v25 = vpop.f32.mrf.mxu0 }
 0x79f   :  { %v2000_v45 = vadd.f32 %v3219_v25, %v2719_v62 }
 0x7a0   :  { %v1991_v9 = vpop.f32.mrf.mxu0 }
 0x7a1   :  { %v1992_v46 = vadd.f32 %v2719_v62, %v1991_v9 }
 0x7a2   :  { %v3222_v58 = vpop.f32.mrf.mxu0 }
 0x7a3   :  { %v2013_v59 = vadd.f32 %v3222_v58, %v2719_v62 }
 0x7a4   :  { %v2004_v39 = vpop.f32.mrf.mxu0 }
 0x7a5   :  { %v2005_v36 = vadd.f32 %v2719_v62, %v2004_v39 }
 0x7a6   :  { %v3223_v21 = vpop.f32.mrf.mxu0 }
 0x7a7   :  { %v2016_v53 = vadd.f32 %v3223_v21, %v2719_v62 }
 0x7a8   :  { %v2007_v35 = vpop.f32.mrf.mxu0 }
 0x7a9   :  { %v2008_v57 = vadd.f32 %v2719_v62, %v2007_v35  ;;  %v3457_v62 = vld [vmem:[#allocation22 + $0x20] sm:$0xff]  }
 0x83c   :  { %v3228_v61 = vpop.f32.mrf.mxu1 }
 0x83d   :  { %v2063_v37 = vadd.f32 %v3228_v61, %v1965_v6  ;;  %v3456_v6 = vld [vmem:[#allocation22 + $0x28] sm:$0xff]  }
 0x83e   :  { %v2054_v63 = vpop.f32.mrf.mxu1 }
 0x83f   :  { %v2055_v29 = vadd.f32 %v2054_v63, %v1957_v5  ;;  %v3454_v5 = vld [vmem:[#allocation22 + $0x38] sm:$0xff]  }
 0x840   :  { %v3229_v4 = vpop.f32.mrf.mxu1 }
 0x841   :  { %v2066_v56 = vadd.f32 %v3229_v4, %v1968_v3 }
 0x842   :  { %v2057_v22 = vpop.f32.mrf.mxu1 }
 0x843   :  { %v2058_v32 = vadd.f32 %v2057_v22, %v1960_v60  ;;  %v2118_v44 = vpack.c.bf16 %v2066_v56, %v2063_v37  ;;  %v3455_v60 = vld [vmem:[#allocation22 + $0x30] sm:$0xff]   ;;  %v3458_v56 = vld [vmem:[#allocation22 + $0x18] sm:$0xff]  }
 0x844   :  { %v3232_v7 = vpop.f32.mrf.mxu1  ;;  %v3459_v22 = vld [vmem:[#allocation22 + $0x10] sm:$0xff]  }
 0x845   :  { %v2117_v40 = vpack.c.bf16 %v2058_v32, %v2055_v29  ;;  %v2079_v28 = vadd.f32 %v3232_v7, %v1981_v51 }
 0x846   :  { %v2070_v8 = vpop.f32.mrf.mxu1 }
 0x847   :  { %3258 = vmatprep.mubr.bf16.mxu1 %v2117_v40  ;;  %v2071_v26 = vadd.f32 %v2070_v8, %v1973_v16 }
 0x848   :  { %v3233_v14 = vpop.f32.mrf.mxu1  ;;  %3259 = vmatmul.mubr.bf16.vlgmr.msra.gmra.mxu1 %v2118_v44 }
 0x849   :  { %v2082_v19 = vadd.f32 %v3233_v14, %v1984_v11  ;;  %3295 = vmatpush3.bf16.msra.mxu1 %v3454_v5 }
 0x84a   :  { %v2073_v20 = vpop.f32.mrf.mxu1  ;;  %3296 = vmatprep.subr.bf16.mxu1 %v3837_v0 }
 0x84b   :  { %v2074_v27 = vadd.f32 %v2073_v20, %v1976_v18  ;;  %v2120_v34 = vpack.c.bf16 %v2082_v19, %v2079_v28  ;;  %v2736_v19 = vld [vmem:[#allocation21] ss:$0 sm:$0xff] }
 0x84c   :  { %v3236_v30 = vpop.f32.mrf.mxu1 }
 0x84d   :  { %v2119_v31 = vpack.c.bf16 %v2074_v27, %v2071_v26  ;;  %v2095_v54 = vadd.f32 %v3236_v30, %v1997_v47  ;;  %3297 = vmatpush3.bf16.msra.mxu1 %v3455_v60  ;;  %v3468_v60 = vld [vmem:[#allocation24 + $0x8] sm:$0xff]  }
 0x84e   :  { %v2086_v38 = vpop.f32.mrf.mxu1  ;;  %3298 = vmatprep.subr.bf16.mxu1 %v3837_v0 }
 0x84f   :  { %3262 = vmatprep.mubr.bf16.mxu1 %v2119_v31  ;;  %v2087_v50 = vadd.f32 %v2086_v38, %v1989_v10 }
 0x850   :  { %v3237_v52 = vpop.f32.mrf.mxu1  ;;  %3263 = vmatmul.mubr.bf16.gmra.mxu1 %v2120_v34 }
 0x851   :  { %v2098_v48 = vadd.f32 %v3237_v52, %v2000_v45  ;;  %3299 = vmatpush3.bf16.msra.mxu1 %v3456_v6  ;;  %v3469_v6 = vld [vmem:[#allocation24] sm:$0xff]  }
 0x852   :  { %v2089_v49 = vpop.f32.mrf.mxu1  ;;  %3300 = vmatprep.subr.bf16.mxu1 %v3837_v0 }
 0x853   :  { %v2090_v33 = vadd.f32 %v2089_v49, %v1992_v46  ;;  %v2122_v23 = vpack.c.bf16 %v2098_v48, %v2095_v54 }
 0x854   :  { %v3240_v12 = vpop.f32.mrf.mxu1 }
 0x855   :  { %v2121_v13 = vpack.c.bf16 %v2090_v33, %v2087_v50  ;;  %v2111_v1 = vadd.f32 %v3240_v12, %v2013_v59  ;;  %3301 = vmatpush3.bf16.msra.mxu1 %v3457_v62  ;;  %v3464_v59 = vld [vmem:[#allocation24 + $0x28] sm:$0xff]  }
 0x856   :  { %v2102_v24 = vpop.f32.mrf.mxu1  ;;  %3302 = vmatprep.subr.bf16.mxu1 %v3837_v0 }
 0x857   :  { %3266 = vmatprep.mubr.bf16.mxu1 %v2121_v13  ;;  %v2103_v61 = vadd.f32 %v2102_v24, %v2005_v36  ;;  %v3462_v36 = vld [vmem:[#allocation24 + $0x38] sm:$0xff]  }
 0x858   :  { %v3241_v55 = vpop.f32.mrf.mxu1  ;;  %3267 = vmatmul.mubr.bf16.gmra.mxu1 %v2122_v23 }
 0x859   :  { %v2114_v2 = vadd.f32 %v3241_v55, %v2016_v53  ;;  %3303 = vmatpush3.bf16.msra.mxu1 %v3458_v56  ;;  %v3460_v53 = vld [vmem:[#allocation22 + $0x8] sm:$0xff]   ;;  %v3461_v55 = vld [vmem:[#allocation22] sm:$0xff]  }
 0x85a   :  { %v2105_v43 = vpop.f32.mrf.mxu1  ;;  %3304 = vmatprep.subr.bf16.mxu1 %v3837_v0  ;;  %v2747_v56 = vld [vmem:[%s3985_s8] ss:$0 sm:$0xff] }
 0x85b   :  { %v2106_v63 = vadd.f32 %v2105_v43, %v2008_v57  ;;  %v2124_v4 = vpack.c.bf16 %v2114_v2, %v2111_v1  ;;  %v3463_v57 = vld [vmem:[#allocation24 + $0x30] sm:$0xff]  }
 0x85c   :  { %v3467_v2 = vld [vmem:[#allocation24 + $0x10] sm:$0xff]  }
 0x85d   :  { %v2123_v3 = vpack.c.bf16 %v2106_v63, %v2103_v61  ;;  %3305 = vmatpush3.bf16.msra.mxu1 %v3459_v22 }
 0x85e   :  { %3306 = vmatprep.subr.bf16.mxu1 %v3837_v0 }
 0x85f   :  { %3270 = vmatprep.mubr.bf16.mxu1 %v2123_v3 }
 0x860   :  { %3271 = vmatmul.mubr.bf16.gmra.mxu1 %v2124_v4 }
 0x861   :  { %3310 = vmatprep.mubr.msk.bf16.mxu1 %vm3838_vm0, %v3837_v0  ;;  %3307 = vmatpush3.bf16.msra.mxu1 %v3460_v53 }
 0x862   :  { %3308 = vmatprep.subr.bf16.mxu1 %v3837_v0 }
 0x865   :  { %3309 = vmatpush3.bf16.msra.mxu1 %v3461_v55 }
 0x908   :  { %v3260_v25 = vpop.f32.mrf.mxu1 }
 0x909   :  { %v2239_v12 = vadd.f32 %v3260_v25, %v2736_v19 }
 0x90a   :  { %v2230_v29 = vpop.f32.mrf.mxu1 }
 0x90b   :  { %v2231_v24 = vadd.f32 %v2736_v19, %v2230_v29 }
 0x90c   :  { %v3261_v32 = vpop.f32.mrf.mxu1 }
 0x90d   :  { %v2242_v33 = vadd.f32 %v3261_v32, %v2736_v19 }
 0x90e   :  { %v2233_v37 = vpop.f32.mrf.mxu1 }
 0x90f   :  { %v2294_v13 = vpack.c.bf16 %v2242_v33, %v2239_v12  ;;  %v2234_v23 = vadd.f32 %v2736_v19, %v2233_v37  ;;  %v2756_v37 = vld [vmem:[%s3995_s29] ss:$0 sm:$0xff] }
 0x910   :  { %v3264_v7 = vpop.f32.mrf.mxu1 }
 0x911   :  { %v2255_v48 = vadd.f32 %v3264_v7, %v2736_v19  ;;  %v2293_v35 = vpack.c.bf16 %v2234_v23, %v2231_v24 }
 0x912   :  { %v2246_v40 = vpop.f32.mrf.mxu1 }
 0x913   :  { %v2247_v50 = vadd.f32 %v2736_v19, %v2246_v40 }
 0x914   :  { %v3265_v44 = vpop.f32.mrf.mxu1 }
 0x915   :  { %v2258_v46 = vadd.f32 %v3265_v44, %v2736_v19 }
 0x916   :  { %v2249_v8 = vpop.f32.mrf.mxu1 }
 0x917   :  { %v2296_v49 = vpack.c.bf16 %v2258_v46, %v2255_v48  ;;  %v2250_v21 = vadd.f32 %v2736_v19, %v2249_v8 }
 0x918   :  { %v3268_v9 = vpop.f32.mrf.mxu1 }
 0x919   :  { %v2271_v39 = vadd.f32 %v3268_v9, %v2736_v19  ;;  %v2295_v54 = vpack.c.bf16 %v2250_v21, %v2247_v50 }
 0x91a   :  { %v2262_v11 = vpop.f32.mrf.mxu1 }
 0x91b   :  { %v2263_v10 = vadd.f32 %v2736_v19, %v2262_v11 }
 0x91c   :  { %v3269_v14 = vpop.f32.mrf.mxu1 }
 0x91d   :  { %v2274_v34 = vadd.f32 %v3269_v14, %v2736_v19 }
 0x91e   :  { %v2265_v16 = vpop.f32.mrf.mxu1 }
 0x91f   :  { %v2298_v45 = vpack.c.bf16 %v2274_v34, %v2271_v39  ;;  %v2266_v52 = vadd.f32 %v2736_v19, %v2265_v16 }
 0x920   :  { %v3272_v18 = vpop.f32.mrf.mxu1 }
 0x921   :  { %v2287_v58 = vadd.f32 %v3272_v18, %v2736_v19  ;;  %v2297_v47 = vpack.c.bf16 %v2266_v52, %v2263_v10 }
 0x922   :  { %v2278_v51 = vpop.f32.mrf.mxu1 }
 0x923   :  { %v2279_v31 = vadd.f32 %v2736_v19, %v2278_v51 }
 0x924   :  { %v3273_v20 = vpop.f32.mrf.mxu1 }
 0x925   :  { %v2290_v26 = vadd.f32 %v3273_v20, %v2736_v19 }
 0x926   :  { %v2281_v27 = vpop.f32.mrf.mxu1 }
 0x927   :  { %v2300_v28 = vpack.c.bf16 %v2290_v26, %v2287_v58  ;;  %v2282_v30 = vadd.f32 %v2736_v19, %v2281_v27 }
 0x929   :  { %3275 = vmatpush3.bf16.msra.mxu0 %v2300_v28  ;;  %v2299_v38 = vpack.c.bf16 %v2282_v30, %v2279_v31 }
 0x92a   :  { %3276 = vmatprep.subr.bf16.mxu0 %v3837_v0 }
 0x92d   :  { %3277 = vmatpush3.bf16.msra.mxu0 %v2299_v38 }
 0x92e   :  { %3278 = vmatprep.subr.bf16.mxu0 %v3837_v0 }
 0x931   :  { %3279 = vmatpush3.bf16.msra.mxu0 %v2298_v45 }
 0x932   :  { %3280 = vmatprep.subr.bf16.mxu0 %v3837_v0 }
 0x935   :  { %3281 = vmatpush3.bf16.msra.mxu0 %v2297_v47 }
 0x936   :  { %3282 = vmatprep.subr.bf16.mxu0 %v3837_v0 }
 0x939   :  { %3283 = vmatpush3.bf16.msra.mxu0 %v2296_v49 }
 0x93a   :  { %3284 = vmatprep.subr.bf16.mxu0 %v3837_v0 }
 0x93d   :  { %3285 = vmatpush3.bf16.msra.mxu0 %v2295_v54 }
 0x93e   :  { %3286 = vmatprep.subr.bf16.mxu0 %v3837_v0 }
 0x941   :  { %3287 = vmatpush3.bf16.msra.mxu0 %v2294_v13 }
 0x942   :  { %3288 = vmatprep.subr.bf16.mxu0 %v3837_v0 }
 0x945   :  { %3289 = vmatpush3.bf16.msra.mxu0 %v2293_v35 }
 0x946   :  { %3314 = vmatprep.subr.bf16.mxu0 %v3837_v0 }
 0x948   :  { %3291 = vmatmul.mubr.msk.bf16.vlgmr.msra.gmra.mxu0 %vm4054_vm5, %v3840_v17  ;;  %v3466_v17 = vld [vmem:[#allocation24 + $0x18] sm:$0xff]  }
 0x949   :  { %3330 = vmatprep.mubr.msk.bf16.mxu0 %vm3838_vm0, %v3837_v0  ;;  %3315 = vmatpush3.bf16.msra.mxu0 %v3462_v36 }
 0x94a   :  { %3316 = vmatprep.subr.bf16.mxu0 %v3837_v0 }
 0x94d   :  { %3317 = vmatpush3.bf16.msra.mxu0 %v3463_v57 }
 0x94e   :  { %3318 = vmatprep.subr.bf16.mxu0 %v3837_v0 }
 0x951   :  { %3319 = vmatpush3.bf16.msra.mxu0 %v3464_v59 }
 0x952   :  { %3320 = vmatprep.subr.bf16.mxu0 %v3837_v0 }
 0x955   :  { %3321 = vmatpush3.bf16.msra.mxu0 %v3465_v15 }
 0x956   :  { %3322 = vmatprep.subr.bf16.mxu0 %v3837_v0 }
 0x959   :  { %3323 = vmatpush3.bf16.msra.mxu0 %v3466_v17 }
 0x95a   :  { %3324 = vmatprep.subr.bf16.mxu0 %v3837_v0 }
 0x95d   :  { %3325 = vmatpush3.bf16.msra.mxu0 %v3467_v2 }
 0x95e   :  { %3326 = vmatprep.subr.bf16.mxu0 %v3837_v0 }
 0x961   :  { %3327 = vmatpush3.bf16.msra.mxu0 %v3468_v60 }
 0x962   :  { %3328 = vmatprep.subr.bf16.mxu0 %v3837_v0 }
 0x965   :  { %3329 = vmatpush3.bf16.msra.mxu0 %v3469_v6 }
 0xa08   :  { %v2335_v43 = vpop.f32.mrf.mxu0 }
 0xa09   :  { %v2342_v1 = vmul.f32 %v2335_v43, %v4286_v41 }
 0xa0a   :  { %v3292_v61 = vpop.f32.mrf.mxu0 }
 0xa0c   :  { %v2338_v63 = vpop.f32.mrf.mxu0 }
 0xa0d   :  { %v2343_v3 = vmul.f32 %v2338_v63, %v4288_v42 }
 0xa0e   :  { %v3293_v4 = vpop.f32.mrf.mxu0 }
 0xa0f   :  { %v2344_v5 = vpack.c.bf16 %v2343_v3, %v2342_v1 }
 0xa11   :  { %3311 = vmatmul.mubr.bf16.vlgmr.msra.gmra.mxu1 %v2344_v5 }
 0xad1   :  { %v2450_v62 = vpop.f32.mrf.mxu1 }
 0xad2   :  { %v2451_v29 = vadd.f32 %v2747_v56, %v2450_v62 }
 0xad3   :  { %v3312_v22 = vpop.f32.mrf.mxu1 }
 0xad5   :  { %v2453_v25 = vpop.f32.mrf.mxu1 }
 0xad6   :  { %v2454_v41 = vadd.f32 %v2747_v56, %v2453_v25 }
 0xad7   :  { %v3313_v32 = vpop.f32.mrf.mxu1 }
 0xad8   :  { %v2457_v42 = vpack.c.bf16 %v2454_v41, %v2451_v29 }
 0xada   :  { %3331 = vmatmul.mubr.bf16.vlgmr.msra.gmra.mxu0 %v2457_v42 }
 0xb9a   :  { %v2563_v7 = vpop.f32.mrf.mxu0 }
 0xb9b   :  { %v2564_v40 = vadd.f32 %v2756_v37, %v2563_v7 }
 0xb9c   :  { %v3332_v44 = vpop.f32.mrf.mxu0 }
 0xb9d   :  { %2570 = vst [vmem:[%s4000_s5] sm:$0xff] %v2564_v40 }
 0xb9e   :  { %v2566_v8 = vpop.f32.mrf.mxu0 }
 0xb9f   :  { %v2567_v0 = vadd.f32 %v2756_v37, %v2566_v8 }
 0xba0   :  { %v3333_v9 = vpop.f32.mrf.mxu0 }
 0xba1   :  { %2571 = vst [vmem:[%s4000_s5 + $0x8] sm:$0xff] %v2567_v0 }
 0xba2   :  { %2576 = vsyncpa [#allocation3], 1 }
 0xba3   :  { %2577 = vsyncpa [#allocation5], 1 }
 0xba4   :  { %2578 = vsyncpa [#allocation8], 1 }
 0xba5   :  { %2579 = vsyncpa [#allocation11], 1 }
 0xba6   :  { %2580 = vsyncpa [#allocation14], 1 }
 0xba7   :  { %2581 = vsyncpa [#allocation17], 1 }
 0xba8   :  { %2582 = vsyncpa [#allocation20], 1 }
 0xba9   :  { %2583 = vsyncpa [#allocation23], 1 }

</bundles_post_ra>
